<compile_context>
chip_gen: v6e
topology: v6e:2x2x1
jax: 0.10.0
libtpu: 0.0.40
codegen_flags: <defaults>
</compile_context>

<pallas_src>
import functools

import jax
import jax.numpy as jnp
from jax import lax
from jax.experimental import pallas as pl
from jax.experimental.pallas import tpu as pltpu


def _mish(x):
    # x * tanh(softplus(x)); stable, branch-free softplus.
    sp = jnp.maximum(x, 0.0) + jnp.log(1.0 + jnp.exp(-jnp.abs(x)))
    return x * jnp.tanh(sp)


def _sigmoid(x):
    # tanh form: no inf intermediates, tanh goes to the EUP slot.
    return 0.5 * (jnp.tanh(0.5 * x) + 1.0)


def _sspf_kernel(x_ref, w1_ref, b1_ref, wmap_ref, bmap_ref,
                 wm_ref, bm_ref, wb_ref, bb_ref, wo_ref, bo_ref,
                 out_ref, *, nb, h, w, c):
    """Processes `nb` images per grid step in a lane-dense (nb*h, w*c) layout."""
    wc = w * c
    rows = nb * h
    f32 = jnp.float32
    bf16 = jnp.bfloat16
    neg = jnp.float32(-jnp.inf)

    # ---- convin: 1x1 conv (+ folded eval BN) + Mish as one block-diag matmul
    # (bf16 operands, f32 accumulation)
    y1 = _mish(jnp.dot(x_ref[...], w1_ref[...],
                       preferred_element_type=f32) + b1_ref[...])

    # ---- hoisted small masks for the separable 5x5 max pools ----------------
    lane = lax.broadcasted_iota(jnp.int32, (1, wc), 1)
    row = lax.broadcasted_iota(jnp.int32, (rows, 1), 0) % h
    w_valid_r = [lane >= d * c for d in (1, 2)]          # source pixel w-d valid
    w_valid_l = [lane < (w - d) * c for d in (1, 2)]     # source pixel w+d valid
    h_valid_u = [row >= d for d in (1, 2)]                # source row h-d valid
    h_valid_d = [row < h - d for d in (1, 2)]             # source row h+d valid

    def pool5(y):
        # separable 5x5 max: lane rolls for W, sublane rolls for H (both XLU);
        # image boundaries masked to -inf (the center value keeps the max
        # finite, so -inf never reaches a matmul or the SE stats).
        t = y
        for i, d in enumerate((1, 2)):
            sr = jnp.where(w_valid_r[i], pltpu.roll(y, d * c, axis=1), neg)
            sl = jnp.where(w_valid_l[i], pltpu.roll(y, wc - d * c, axis=1), neg)
            t = jnp.maximum(t, jnp.maximum(sr, sl))
        o = t
        for i, d in enumerate((1, 2)):
            su = jnp.where(h_valid_u[i], pltpu.roll(t, d, axis=0), neg)
            sd = jnp.where(h_valid_d[i], pltpu.roll(t, rows - d, axis=0), neg)
            o = jnp.maximum(o, jnp.maximum(su, sd))
        return o

    y2 = pool5(y1)
    y3 = pool5(y2)
    y4 = pool5(y3)

    # ---- block-batched SE stats over all nb images at once ------------------
    ycat2 = jnp.concatenate((y1, y2, y3, y4), axis=1)     # (rows, 4*wc)
    ycat3 = ycat2.reshape(nb, h, 4 * wc)                  # h % 8 == 0 -> cheap
    s_all = jnp.sum(ycat3, axis=1)                        # (nb, 4*wc) per-group sums
    m_all = jnp.max(ycat3, axis=1)                        # (nb, 4*wc) per-group maxes

    # sums stay un-reduced across W groups: the W-tiled squeeze weight sums
    # them (divisor hw folded into wmap in the wrapper). Only the max stat
    # needs the log-step lane roll-reduce, done per part so rolls never cross
    # part boundaries (W must be a power of two).
    maxs = []
    for p in range(4):
        m = m_all[:, p * wc:(p + 1) * wc]
        step = c
        while step < wc:
            m = jnp.maximum(m, pltpu.roll(m, step, axis=1))
            step *= 2
        maxs.append(m)
    se = jnp.concatenate([s_all] + maxs, axis=1)          # (nb, 8*w*c)

    hid = _mish(jnp.dot(se.astype(bf16), wmap_ref[...],
                        preferred_element_type=f32) + bmap_ref[...])
    # excitation dots are tiny (M = nb); keep them f32 for accuracy.
    ymul = _sigmoid(jnp.dot(hid, wm_ref[...],
                            preferred_element_type=f32) + bm_ref[...])
    ybias = jnp.dot(hid, wb_ref[...],
                    preferred_element_type=f32) + bb_ref[...]

    # ---- scale/bias broadcast over h + one big convout matmul ---------------
    z = (ycat3 * ymul[:, None, :] + ybias[:, None, :]).reshape(rows, 4 * wc)
    out_ref[...] = jnp.dot(z.astype(bf16), wo_ref[...],
                           preferred_element_type=f32) + bo_ref[...]


def sspf_forward(x_nchw, params):
    n, cin, h, w = x_nchw.shape
    c = params["w1"].shape[1]                 # Cmid = in_ch // 2
    out_ch = params["wo"].shape[1]
    hw = h * w
    wc = w * c
    f32 = jnp.float32
    bf16 = jnp.bfloat16

    assert w > 0 and (w & (w - 1)) == 0, "SE max lane-reduce needs power-of-two W"
    assert h % 8 == 0, "h must be a multiple of 8 for clean sublane tiling"
    # TODO(synk): add a generic-W fallback for the SE max lane roll-reduce.

    # images per grid step: largest divisor of N, capped at 8 and capped so the
    # grid keeps >= 2 steps (both v7x TensorCores busy). For large N*H, prefer
    # nb with rows = nb*h a multiple of 256 (v6e/v7x MXU) subject to VMEM.
    max_nb = min(n, 8)
    if n >= 2:
        max_nb = max(1, min(max_nb, n // 2))
    nb = 1
    for cand in range(max_nb, 0, -1):
        if n % cand == 0:
            nb = cand
            break
    rows = nb * h

    # ---- lane-dense input: (N*H, W*Cin), bf16 for the MXU -------------------
    x = jnp.transpose(x_nchw.astype(f32), (0, 2, 3, 1)).reshape(n * h, w * cin)
    x = x.astype(bf16)

    eye_w = jnp.eye(w, dtype=f32)

    # convin as a block-diagonal matmul over the lane-dense layout
    w1_bd = jnp.einsum("wv,ij->wivj", eye_w, params["w1"]).reshape(w * cin, wc)
    w1_bd = w1_bd.astype(bf16)
    b1_d = jnp.tile(params["b1"], (1, w))

    # SE squeeze weight: avg blocks consume the UN-reduced per-group sums
    # (the matmul contraction sums across W groups -> divisor is hw, not w*hw);
    # max blocks consume the W-replicated per-channel max (divisor w).
    wma, wmm = params["wma"], params["wmm"]            # (Cy, mid_se) each
    blocks = [jnp.tile(wma[p * c:(p + 1) * c, :], (w, 1)) / hw
              for p in range(4)]
    blocks += [jnp.tile(wmm[p * c:(p + 1) * c, :], (w, 1)) / w
               for p in range(4)]
    wmap_d = jnp.concatenate(blocks, axis=0).astype(bf16)   # (8*W*C, mid_se)

    # ymul / ybias weights tiled to the lane-dense channel layout (kept f32)
    def tile_cols(a):                                  # (.., Cy) -> (.., 4*W*C)
        return jnp.concatenate(
            [jnp.tile(a[:, p * c:(p + 1) * c], (1, w)) for p in range(4)],
            axis=1)

    wm_d, bm_d = tile_cols(params["wm"]), tile_cols(params["bm"])
    wb_d, bb_d = tile_cols(params["wb"]), tile_cols(params["bb"])

    # convout as a block-diagonal matmul (lane-dense concat layout -> output)
    wo4 = params["wo"].reshape(4, c, out_ch)
    wo_d = jnp.einsum("wv,pco->pwcvo", eye_w, wo4).reshape(4 * wc, w * out_ch)
    wo_d = wo_d.astype(bf16)
    bo_d = jnp.tile(params["bo"], (1, w))

    weights = (w1_bd, b1_d, wmap_d, params["bmap"], wm_d, bm_d,
               wb_d, bb_d, wo_d, bo_d)

    in_specs = [pl.BlockSpec((rows, w * cin), lambda i: (i, 0))]
    in_specs += [pl.BlockSpec(arr.shape, lambda i, nd=arr.ndim: (0,) * nd)
                 for arr in weights]
    out_spec = pl.BlockSpec((rows, w * out_ch), lambda i: (i, 0))

    out_flat = pl.pallas_call(
        functools.partial(_sspf_kernel, nb=nb, h=h, w=w, c=c),
        out_shape=jax.ShapeDtypeStruct((n * h, w * out_ch), f32),
        grid_spec=pltpu.PrefetchScalarGridSpec(
            num_scalar_prefetch=0,
            grid=(n // nb,),
            in_specs=in_specs,
            out_specs=out_spec),
        compiler_params=pltpu.CompilerParams(
            dimension_semantics=("parallel",),
            # generous for the working set, safely under v7x's 64 MiB/TC
            vmem_limit_bytes=48 * 1024 * 1024),
    )(x, *weights)

    out = out_flat.reshape(n, h, w, out_ch)
    return jnp.transpose(out, (0, 3, 1, 2))


def make_params(key, in_ch, out_ch):
    c = in_ch // 2
    cy = 4 * c
    mid_se = max(int(cy * 4.0), 4)
    ks = jax.random.split(key, 10)

    def init(k, shape, scale=0.1):
        return jax.random.normal(k, shape, dtype=jnp.float32) * scale

    # convin: Conv2d(in_ch, c, 1) with bias, stored as (Cin, Cmid) matmul weight.
    w1 = init(ks[0], (in_ch, c))
    b1 = init(ks[1], (1, c))
    # BatchNorm2d(c), eval mode, default init -> fold into the 1x1 conv.
    gamma = jnp.ones((c,), jnp.float32)
    beta = jnp.zeros((c,), jnp.float32)
    rmean = jnp.zeros((c,), jnp.float32)
    rvar = jnp.ones((c,), jnp.float32)
    scale = gamma / jnp.sqrt(rvar + 1e-5)
    w1_eff = w1 * scale[None, :]
    b1_eff = (b1 - rmean[None, :]) * scale[None, :] + beta[None, :]

    # BiasedSqueezeAndExcitation(cy): conv_map(2*cy->mid_se), conv_bias/conv_mul
    wmap = init(ks[2], (2 * cy, mid_se))
    bmap = init(ks[3], (1, mid_se))
    wma, wmm = wmap[:cy], wmap[cy:]      # cat([avgpool, maxpool], dim=1) order
    wb = init(ks[4], (mid_se, cy))
    bb = init(ks[5], (1, cy))
    wm = init(ks[6], (mid_se, cy))
    bm = init(ks[7], (1, cy))

    # convout: Conv2d(cy, out_ch, 1)
    wo = init(ks[8], (cy, out_ch))
    bo = init(ks[9], (1, out_ch))

    return dict(w1=w1_eff, b1=b1_eff, wma=wma, wmm=wmm, bmap=bmap,
                wb=wb, bb=bb, wm=wm, bm=bm, wo=wo, bo=bo)


def sspf_reference(x_nchw, params):
    """Pure-JAX f32 reference (NHWC internally) mirroring the PyTorch forward."""
    x = jnp.transpose(x_nchw.astype(jnp.float32), (0, 2, 3, 1))
    y1 = _mish(jnp.einsum("nhwc,cd->nhwd", x, params["w1"]) + params["b1"][0])

    def pool(y):
        return lax.reduce_window(y, -jnp.inf, lax.max, (1, 5, 5, 1),
                                 (1, 1, 1, 1),
                                 ((0, 0), (2, 2), (2, 2), (0, 0)))

    y2 = pool(y1)
    y3 = pool(y2)
    y4 = pool(y3)
    ycat = jnp.concatenate([y1, y2, y3, y4], axis=-1)
    avg = jnp.mean(ycat, axis=(1, 2))
    mx = jnp.max(ycat, axis=(1, 2))
    hsc = _mish(avg @ params["wma"] + mx @ params["wmm"] + params["bmap"])
    ybias = hsc @ params["wb"] + params["bb"]
    ymul = _sigmoid(hsc @ params["wm"] + params["bm"])
    z = ycat * ymul[:, None, None, :] + ybias[:, None, None, :]
    out = jnp.einsum("nhwc,cd->nhwd", z, params["wo"]) + params["bo"][0]
    return jnp.transpose(out, (0, 3, 1, 2))


if __name__ == "__main__":
    key = jax.random.PRNGKey(0)
    kx, kp = jax.random.split(key)

    N, in_ch, H, W = 2, 16, 16, 16
    out_ch = 16

    x = jax.random.normal(kx, (N, in_ch, H, W), dtype=jnp.float32)
    params = make_params(kp, in_ch, out_ch)

    out = jax.jit(lambda xx: sspf_forward(xx, params))(x)
    out = jax.block_until_ready(out)

    assert out.shape == (N, out_ch, H, W), out.shape

    ref = sspf_reference(x, params)
    err = float(jnp.max(jnp.abs(out - ref)))
    # bf16 MXU operands (f32 accumulation) vs an all-f32 reference.
    assert err < 2e-2, f"max abs error vs reference: {err}"

    print("KERNEL_OK")
</pallas_src>

<mosaic_0001>
module attributes {stable_mosaic.version = 11 : i64} {
  func.func @_sspf_kernel(%arg0: i32, %arg1: memref<16x256xbf16, #tpu.memory_space<vmem>>, %arg2: memref<256x128xbf16, #tpu.memory_space<vmem>>, %arg3: memref<1x128xf32, #tpu.memory_space<vmem>>, %arg4: memref<1024x128xbf16, #tpu.memory_space<vmem>>, %arg5: memref<1x128xf32, #tpu.memory_space<vmem>>, %arg6: memref<128x512xf32, #tpu.memory_space<vmem>>, %arg7: memref<1x512xf32, #tpu.memory_space<vmem>>, %arg8: memref<128x512xf32, #tpu.memory_space<vmem>>, %arg9: memref<1x512xf32, #tpu.memory_space<vmem>>, %arg10: memref<512x256xbf16, #tpu.memory_space<vmem>>, %arg11: memref<1x256xf32, #tpu.memory_space<vmem>>, %arg12: memref<16x256xf32, #tpu.memory_space<vmem>>) attributes {dimension_semantics = [#tpu.dimension_semantics<parallel>], iteration_bounds = array<i64: 2>, scalar_prefetch = 0 : i64, scratch_operands = 0 : i64, tpu.core_type = #tpu.core_type<tc>, window_params = [{transform_indices = @transform_0, window_bounds = array<i64: 16, 256>}, {pipeline_mode = #tpu.pipeline_mode<synchronous>, transform_indices = @transform_1, window_bounds = array<i64: 256, 128>}, {pipeline_mode = #tpu.pipeline_mode<synchronous>, transform_indices = @transform_2, window_bounds = array<i64: 1, 128>}, {pipeline_mode = #tpu.pipeline_mode<synchronous>, transform_indices = @transform_3, window_bounds = array<i64: 1024, 128>}, {pipeline_mode = #tpu.pipeline_mode<synchronous>, transform_indices = @transform_4, window_bounds = array<i64: 1, 128>}, {pipeline_mode = #tpu.pipeline_mode<synchronous>, transform_indices = @transform_5, window_bounds = array<i64: 128, 512>}, {pipeline_mode = #tpu.pipeline_mode<synchronous>, transform_indices = @transform_6, window_bounds = array<i64: 1, 512>}, {pipeline_mode = #tpu.pipeline_mode<synchronous>, transform_indices = @transform_7, window_bounds = array<i64: 128, 512>}, {pipeline_mode = #tpu.pipeline_mode<synchronous>, transform_indices = @transform_8, window_bounds = array<i64: 1, 512>}, {pipeline_mode = #tpu.pipeline_mode<synchronous>, transform_indices = @transform_9, window_bounds = array<i64: 512, 256>}, {pipeline_mode = #tpu.pipeline_mode<synchronous>, transform_indices = @transform_10, window_bounds = array<i64: 1, 256>}, {transform_indices = @transform_11, window_bounds = array<i64: 16, 256>}]} {
    %c0 = arith.constant 0 : index
    %c0_0 = arith.constant 0 : index
    %0 = vector.load %arg1[%c0, %c0_0] : memref<16x256xbf16, #tpu.memory_space<vmem>>, vector<16x256xbf16>
    %c0_1 = arith.constant 0 : index
    %c0_2 = arith.constant 0 : index
    %1 = vector.load %arg2[%c0_1, %c0_2] : memref<256x128xbf16, #tpu.memory_space<vmem>>, vector<256x128xbf16>
    %cst = arith.constant dense<0.000000e+00> : vector<16x128xf32>
    %2 = tpu.matmul %0, %1, %cst {dimension_numbers = #tpu.dot_dimension_numbers<[1], [0], [0], [1], [0, 0, 1, 1], [], []>} : vector<16x256xbf16>, vector<256x128xbf16>, vector<16x128xf32> -> vector<16x128xf32>
    %c0_3 = arith.constant 0 : index
    %c0_4 = arith.constant 0 : index
    %3 = vector.load %arg3[%c0_3, %c0_4] : memref<1x128xf32, #tpu.memory_space<vmem>>, vector<1x128xf32>
    %4 = vector.broadcast %3 : vector<1x128xf32> to vector<16x128xf32>
    %5 = arith.addf %2, %4 : vector<16x128xf32>
    %cst_5 = arith.constant 0.000000e+00 : f32
    %6 = vector.broadcast %cst_5 : f32 to vector<16x128xf32>
    %7 = arith.maximumf %5, %6 : vector<16x128xf32>
    %8 = math.absf %5 : vector<16x128xf32>
    %cst_6 = arith.constant 0.000000e+00 : f32
    %9 = vector.broadcast %cst_6 : f32 to vector<16x128xf32>
    %10 = arith.subf %9, %8 : vector<16x128xf32>
    %11 = math.exp %10 : vector<16x128xf32>
    %cst_7 = arith.constant 1.000000e+00 : f32
    %12 = vector.broadcast %cst_7 : f32 to vector<16x128xf32>
    %13 = arith.addf %12, %11 : vector<16x128xf32>
    %14 = math.log %13 : vector<16x128xf32>
    %15 = arith.addf %7, %14 : vector<16x128xf32>
    %16 = math.tanh %15 : vector<16x128xf32>
    %17 = arith.mulf %5, %16 : vector<16x128xf32>
    %18 = tpu.iota {dimensions = array<i32: 1>} : vector<1x128xi32>
    %19 = tpu.iota {dimensions = array<i32: 0>} : vector<16x1xi32>
    %c16_i32 = arith.constant 16 : i32
    %c0_i32 = arith.constant 0 : i32
    %20 = arith.cmpi eq, %c16_i32, %c0_i32 : i32
    %c1_i32 = arith.constant 1 : i32
    %21 = arith.select %20, %c1_i32, %c16_i32 : i32
    %22 = vector.broadcast %21 : i32 to vector<16x1xi32>
    %23 = arith.remsi %19, %22 : vector<16x1xi32>
    %c0_i32_8 = arith.constant 0 : i32
    %24 = vector.broadcast %c0_i32_8 : i32 to vector<16x1xi32>
    %25 = arith.cmpi ne, %23, %24 : vector<16x1xi32>
    %c0_i32_9 = arith.constant 0 : i32
    %26 = vector.broadcast %c0_i32_9 : i32 to vector<16x1xi32>
    %27 = arith.cmpi slt, %23, %26 : vector<16x1xi32>
    %c0_i32_10 = arith.constant 0 : i32
    %28 = arith.cmpi slt, %21, %c0_i32_10 : i32
    %29 = vector.broadcast %28 : i1 to vector<16x1xi1>
    %30 = vector.broadcast %29 : vector<16x1xi1> to vector<16x1xi1>
    %31 = arith.xori %27, %30 : vector<16x1xi1>
    %32 = arith.andi %31, %25 : vector<16x1xi1>
    %33 = vector.broadcast %21 : i32 to vector<16x1xi32>
    %34 = arith.addi %23, %33 : vector<16x1xi32>
    %35 = arith.select %32, %34, %23 : vector<16x1xi1>, vector<16x1xi32>
    %c8_i32 = arith.constant 8 : i32
    %36 = vector.broadcast %c8_i32 : i32 to vector<1x128xi32>
    %37 = arith.cmpi sge, %18, %36 : vector<1x128xi32>
    %c16_i32_11 = arith.constant 16 : i32
    %38 = vector.broadcast %c16_i32_11 : i32 to vector<1x128xi32>
    %39 = arith.cmpi sge, %18, %38 : vector<1x128xi32>
    %c120_i32 = arith.constant 120 : i32
    %40 = vector.broadcast %c120_i32 : i32 to vector<1x128xi32>
    %41 = arith.cmpi slt, %18, %40 : vector<1x128xi32>
    %c112_i32 = arith.constant 112 : i32
    %42 = vector.broadcast %c112_i32 : i32 to vector<1x128xi32>
    %43 = arith.cmpi slt, %18, %42 : vector<1x128xi32>
    %c1_i32_12 = arith.constant 1 : i32
    %44 = vector.broadcast %c1_i32_12 : i32 to vector<16x1xi32>
    %45 = arith.cmpi sge, %35, %44 : vector<16x1xi32>
    %c2_i32 = arith.constant 2 : i32
    %46 = vector.broadcast %c2_i32 : i32 to vector<16x1xi32>
    %47 = arith.cmpi sge, %35, %46 : vector<16x1xi32>
    %c15_i32 = arith.constant 15 : i32
    %48 = vector.broadcast %c15_i32 : i32 to vector<16x1xi32>
    %49 = arith.cmpi slt, %35, %48 : vector<16x1xi32>
    %c14_i32 = arith.constant 14 : i32
    %50 = vector.broadcast %c14_i32 : i32 to vector<16x1xi32>
    %51 = arith.cmpi slt, %35, %50 : vector<16x1xi32>
    %c8_i32_13 = arith.constant 8 : i32
    %52 = tpu.dynamic_rotate %17 by %c8_i32_13 dim 1 : vector<16x128xf32>, i32 -> vector<16x128xf32>
    %cst_14 = arith.constant 0xFF800000 : f32
    %53 = vector.shape_cast %37 : vector<1x128xi1> to vector<1x128xi1>
    %54 = vector.broadcast %53 : vector<1x128xi1> to vector<16x128xi1>
    %55 = vector.broadcast %cst_14 : f32 to vector<16x128xf32>
    %56 = arith.select %54, %52, %55 : vector<16x128xi1>, vector<16x128xf32>
    %c120_i32_15 = arith.constant 120 : i32
    %57 = tpu.dynamic_rotate %17 by %c120_i32_15 dim 1 : vector<16x128xf32>, i32 -> vector<16x128xf32>
    %cst_16 = arith.constant 0xFF800000 : f32
    %58 = vector.shape_cast %41 : vector<1x128xi1> to vector<1x128xi1>
    %59 = vector.broadcast %58 : vector<1x128xi1> to vector<16x128xi1>
    %60 = vector.broadcast %cst_16 : f32 to vector<16x128xf32>
    %61 = arith.select %59, %57, %60 : vector<16x128xi1>, vector<16x128xf32>
    %62 = arith.maximumf %56, %61 : vector<16x128xf32>
    %63 = arith.maximumf %17, %62 : vector<16x128xf32>
    %c16_i32_17 = arith.constant 16 : i32
    %64 = tpu.dynamic_rotate %17 by %c16_i32_17 dim 1 : vector<16x128xf32>, i32 -> vector<16x128xf32>
    %cst_18 = arith.constant 0xFF800000 : f32
    %65 = vector.shape_cast %39 : vector<1x128xi1> to vector<1x128xi1>
    %66 = vector.broadcast %65 : vector<1x128xi1> to vector<16x128xi1>
    %67 = vector.broadcast %cst_18 : f32 to vector<16x128xf32>
    %68 = arith.select %66, %64, %67 : vector<16x128xi1>, vector<16x128xf32>
    %c112_i32_19 = arith.constant 112 : i32
    %69 = tpu.dynamic_rotate %17 by %c112_i32_19 dim 1 : vector<16x128xf32>, i32 -> vector<16x128xf32>
    %cst_20 = arith.constant 0xFF800000 : f32
    %70 = vector.shape_cast %43 : vector<1x128xi1> to vector<1x128xi1>
    %71 = vector.broadcast %70 : vector<1x128xi1> to vector<16x128xi1>
    %72 = vector.broadcast %cst_20 : f32 to vector<16x128xf32>
    %73 = arith.select %71, %69, %72 : vector<16x128xi1>, vector<16x128xf32>
    %74 = arith.maximumf %68, %73 : vector<16x128xf32>
    %75 = arith.maximumf %63, %74 : vector<16x128xf32>
    %c1_i32_21 = arith.constant 1 : i32
    %76 = tpu.dynamic_rotate %75 by %c1_i32_21 dim 0 : vector<16x128xf32>, i32 -> vector<16x128xf32>
    %cst_22 = arith.constant 0xFF800000 : f32
    %77 = vector.shape_cast %45 : vector<16x1xi1> to vector<16x1xi1>
    %78 = vector.broadcast %77 : vector<16x1xi1> to vector<16x128xi1>
    %79 = vector.broadcast %cst_22 : f32 to vector<16x128xf32>
    %80 = arith.select %78, %76, %79 : vector<16x128xi1>, vector<16x128xf32>
    %c15_i32_23 = arith.constant 15 : i32
    %81 = tpu.dynamic_rotate %75 by %c15_i32_23 dim 0 : vector<16x128xf32>, i32 -> vector<16x128xf32>
    %cst_24 = arith.constant 0xFF800000 : f32
    %82 = vector.shape_cast %49 : vector<16x1xi1> to vector<16x1xi1>
    %83 = vector.broadcast %82 : vector<16x1xi1> to vector<16x128xi1>
    %84 = vector.broadcast %cst_24 : f32 to vector<16x128xf32>
    %85 = arith.select %83, %81, %84 : vector<16x128xi1>, vector<16x128xf32>
    %86 = arith.maximumf %80, %85 : vector<16x128xf32>
    %87 = arith.maximumf %75, %86 : vector<16x128xf32>
    %c2_i32_25 = arith.constant 2 : i32
    %88 = tpu.dynamic_rotate %75 by %c2_i32_25 dim 0 : vector<16x128xf32>, i32 -> vector<16x128xf32>
    %cst_26 = arith.constant 0xFF800000 : f32
    %89 = vector.shape_cast %47 : vector<16x1xi1> to vector<16x1xi1>
    %90 = vector.broadcast %89 : vector<16x1xi1> to vector<16x128xi1>
    %91 = vector.broadcast %cst_26 : f32 to vector<16x128xf32>
    %92 = arith.select %90, %88, %91 : vector<16x128xi1>, vector<16x128xf32>
    %c14_i32_27 = arith.constant 14 : i32
    %93 = tpu.dynamic_rotate %75 by %c14_i32_27 dim 0 : vector<16x128xf32>, i32 -> vector<16x128xf32>
    %cst_28 = arith.constant 0xFF800000 : f32
    %94 = vector.shape_cast %51 : vector<16x1xi1> to vector<16x1xi1>
    %95 = vector.broadcast %94 : vector<16x1xi1> to vector<16x128xi1>
    %96 = vector.broadcast %cst_28 : f32 to vector<16x128xf32>
    %97 = arith.select %95, %93, %96 : vector<16x128xi1>, vector<16x128xf32>
    %98 = arith.maximumf %92, %97 : vector<16x128xf32>
    %99 = arith.maximumf %87, %98 : vector<16x128xf32>
    %c8_i32_29 = arith.constant 8 : i32
    %100 = tpu.dynamic_rotate %99 by %c8_i32_29 dim 1 : vector<16x128xf32>, i32 -> vector<16x128xf32>
    %cst_30 = arith.constant 0xFF800000 : f32
    %101 = vector.shape_cast %37 : vector<1x128xi1> to vector<1x128xi1>
    %102 = vector.broadcast %101 : vector<1x128xi1> to vector<16x128xi1>
    %103 = vector.broadcast %cst_30 : f32 to vector<16x128xf32>
    %104 = arith.select %102, %100, %103 : vector<16x128xi1>, vector<16x128xf32>
    %c120_i32_31 = arith.constant 120 : i32
    %105 = tpu.dynamic_rotate %99 by %c120_i32_31 dim 1 : vector<16x128xf32>, i32 -> vector<16x128xf32>
    %cst_32 = arith.constant 0xFF800000 : f32
    %106 = vector.shape_cast %41 : vector<1x128xi1> to vector<1x128xi1>
    %107 = vector.broadcast %106 : vector<1x128xi1> to vector<16x128xi1>
    %108 = vector.broadcast %cst_32 : f32 to vector<16x128xf32>
    %109 = arith.select %107, %105, %108 : vector<16x128xi1>, vector<16x128xf32>
    %110 = arith.maximumf %104, %109 : vector<16x128xf32>
    %111 = arith.maximumf %99, %110 : vector<16x128xf32>
    %c16_i32_33 = arith.constant 16 : i32
    %112 = tpu.dynamic_rotate %99 by %c16_i32_33 dim 1 : vector<16x128xf32>, i32 -> vector<16x128xf32>
    %cst_34 = arith.constant 0xFF800000 : f32
    %113 = vector.shape_cast %39 : vector<1x128xi1> to vector<1x128xi1>
    %114 = vector.broadcast %113 : vector<1x128xi1> to vector<16x128xi1>
    %115 = vector.broadcast %cst_34 : f32 to vector<16x128xf32>
    %116 = arith.select %114, %112, %115 : vector<16x128xi1>, vector<16x128xf32>
    %c112_i32_35 = arith.constant 112 : i32
    %117 = tpu.dynamic_rotate %99 by %c112_i32_35 dim 1 : vector<16x128xf32>, i32 -> vector<16x128xf32>
    %cst_36 = arith.constant 0xFF800000 : f32
    %118 = vector.shape_cast %43 : vector<1x128xi1> to vector<1x128xi1>
    %119 = vector.broadcast %118 : vector<1x128xi1> to vector<16x128xi1>
    %120 = vector.broadcast %cst_36 : f32 to vector<16x128xf32>
    %121 = arith.select %119, %117, %120 : vector<16x128xi1>, vector<16x128xf32>
    %122 = arith.maximumf %116, %121 : vector<16x128xf32>
    %123 = arith.maximumf %111, %122 : vector<16x128xf32>
    %c1_i32_37 = arith.constant 1 : i32
    %124 = tpu.dynamic_rotate %123 by %c1_i32_37 dim 0 : vector<16x128xf32>, i32 -> vector<16x128xf32>
    %cst_38 = arith.constant 0xFF800000 : f32
    %125 = vector.shape_cast %45 : vector<16x1xi1> to vector<16x1xi1>
    %126 = vector.broadcast %125 : vector<16x1xi1> to vector<16x128xi1>
    %127 = vector.broadcast %cst_38 : f32 to vector<16x128xf32>
    %128 = arith.select %126, %124, %127 : vector<16x128xi1>, vector<16x128xf32>
    %c15_i32_39 = arith.constant 15 : i32
    %129 = tpu.dynamic_rotate %123 by %c15_i32_39 dim 0 : vector<16x128xf32>, i32 -> vector<16x128xf32>
    %cst_40 = arith.constant 0xFF800000 : f32
    %130 = vector.shape_cast %49 : vector<16x1xi1> to vector<16x1xi1>
    %131 = vector.broadcast %130 : vector<16x1xi1> to vector<16x128xi1>
    %132 = vector.broadcast %cst_40 : f32 to vector<16x128xf32>
    %133 = arith.select %131, %129, %132 : vector<16x128xi1>, vector<16x128xf32>
    %134 = arith.maximumf %128, %133 : vector<16x128xf32>
    %135 = arith.maximumf %123, %134 : vector<16x128xf32>
    %c2_i32_41 = arith.constant 2 : i32
    %136 = tpu.dynamic_rotate %123 by %c2_i32_41 dim 0 : vector<16x128xf32>, i32 -> vector<16x128xf32>
    %cst_42 = arith.constant 0xFF800000 : f32
    %137 = vector.shape_cast %47 : vector<16x1xi1> to vector<16x1xi1>
    %138 = vector.broadcast %137 : vector<16x1xi1> to vector<16x128xi1>
    %139 = vector.broadcast %cst_42 : f32 to vector<16x128xf32>
    %140 = arith.select %138, %136, %139 : vector<16x128xi1>, vector<16x128xf32>
    %c14_i32_43 = arith.constant 14 : i32
    %141 = tpu.dynamic_rotate %123 by %c14_i32_43 dim 0 : vector<16x128xf32>, i32 -> vector<16x128xf32>
    %cst_44 = arith.constant 0xFF800000 : f32
    %142 = vector.shape_cast %51 : vector<16x1xi1> to vector<16x1xi1>
    %143 = vector.broadcast %142 : vector<16x1xi1> to vector<16x128xi1>
    %144 = vector.broadcast %cst_44 : f32 to vector<16x128xf32>
    %145 = arith.select %143, %141, %144 : vector<16x128xi1>, vector<16x128xf32>
    %146 = arith.maximumf %140, %145 : vector<16x128xf32>
    %147 = arith.maximumf %135, %146 : vector<16x128xf32>
    %c8_i32_45 = arith.constant 8 : i32
    %148 = tpu.dynamic_rotate %147 by %c8_i32_45 dim 1 : vector<16x128xf32>, i32 -> vector<16x128xf32>
    %cst_46 = arith.constant 0xFF800000 : f32
    %149 = vector.shape_cast %37 : vector<1x128xi1> to vector<1x128xi1>
    %150 = vector.broadcast %149 : vector<1x128xi1> to vector<16x128xi1>
    %151 = vector.broadcast %cst_46 : f32 to vector<16x128xf32>
    %152 = arith.select %150, %148, %151 : vector<16x128xi1>, vector<16x128xf32>
    %c120_i32_47 = arith.constant 120 : i32
    %153 = tpu.dynamic_rotate %147 by %c120_i32_47 dim 1 : vector<16x128xf32>, i32 -> vector<16x128xf32>
    %cst_48 = arith.constant 0xFF800000 : f32
    %154 = vector.shape_cast %41 : vector<1x128xi1> to vector<1x128xi1>
    %155 = vector.broadcast %154 : vector<1x128xi1> to vector<16x128xi1>
    %156 = vector.broadcast %cst_48 : f32 to vector<16x128xf32>
    %157 = arith.select %155, %153, %156 : vector<16x128xi1>, vector<16x128xf32>
    %158 = arith.maximumf %152, %157 : vector<16x128xf32>
    %159 = arith.maximumf %147, %158 : vector<16x128xf32>
    %c16_i32_49 = arith.constant 16 : i32
    %160 = tpu.dynamic_rotate %147 by %c16_i32_49 dim 1 : vector<16x128xf32>, i32 -> vector<16x128xf32>
    %cst_50 = arith.constant 0xFF800000 : f32
    %161 = vector.shape_cast %39 : vector<1x128xi1> to vector<1x128xi1>
    %162 = vector.broadcast %161 : vector<1x128xi1> to vector<16x128xi1>
    %163 = vector.broadcast %cst_50 : f32 to vector<16x128xf32>
    %164 = arith.select %162, %160, %163 : vector<16x128xi1>, vector<16x128xf32>
    %c112_i32_51 = arith.constant 112 : i32
    %165 = tpu.dynamic_rotate %147 by %c112_i32_51 dim 1 : vector<16x128xf32>, i32 -> vector<16x128xf32>
    %cst_52 = arith.constant 0xFF800000 : f32
    %166 = vector.shape_cast %43 : vector<1x128xi1> to vector<1x128xi1>
    %167 = vector.broadcast %166 : vector<1x128xi1> to vector<16x128xi1>
    %168 = vector.broadcast %cst_52 : f32 to vector<16x128xf32>
    %169 = arith.select %167, %165, %168 : vector<16x128xi1>, vector<16x128xf32>
    %170 = arith.maximumf %164, %169 : vector<16x128xf32>
    %171 = arith.maximumf %159, %170 : vector<16x128xf32>
    %c1_i32_53 = arith.constant 1 : i32
    %172 = tpu.dynamic_rotate %171 by %c1_i32_53 dim 0 : vector<16x128xf32>, i32 -> vector<16x128xf32>
    %cst_54 = arith.constant 0xFF800000 : f32
    %173 = vector.shape_cast %45 : vector<16x1xi1> to vector<16x1xi1>
    %174 = vector.broadcast %173 : vector<16x1xi1> to vector<16x128xi1>
    %175 = vector.broadcast %cst_54 : f32 to vector<16x128xf32>
    %176 = arith.select %174, %172, %175 : vector<16x128xi1>, vector<16x128xf32>
    %c15_i32_55 = arith.constant 15 : i32
    %177 = tpu.dynamic_rotate %171 by %c15_i32_55 dim 0 : vector<16x128xf32>, i32 -> vector<16x128xf32>
    %cst_56 = arith.constant 0xFF800000 : f32
    %178 = vector.shape_cast %49 : vector<16x1xi1> to vector<16x1xi1>
    %179 = vector.broadcast %178 : vector<16x1xi1> to vector<16x128xi1>
    %180 = vector.broadcast %cst_56 : f32 to vector<16x128xf32>
    %181 = arith.select %179, %177, %180 : vector<16x128xi1>, vector<16x128xf32>
    %182 = arith.maximumf %176, %181 : vector<16x128xf32>
    %183 = arith.maximumf %171, %182 : vector<16x128xf32>
    %c2_i32_57 = arith.constant 2 : i32
    %184 = tpu.dynamic_rotate %171 by %c2_i32_57 dim 0 : vector<16x128xf32>, i32 -> vector<16x128xf32>
    %cst_58 = arith.constant 0xFF800000 : f32
    %185 = vector.shape_cast %47 : vector<16x1xi1> to vector<16x1xi1>
    %186 = vector.broadcast %185 : vector<16x1xi1> to vector<16x128xi1>
    %187 = vector.broadcast %cst_58 : f32 to vector<16x128xf32>
    %188 = arith.select %186, %184, %187 : vector<16x128xi1>, vector<16x128xf32>
    %c14_i32_59 = arith.constant 14 : i32
    %189 = tpu.dynamic_rotate %171 by %c14_i32_59 dim 0 : vector<16x128xf32>, i32 -> vector<16x128xf32>
    %cst_60 = arith.constant 0xFF800000 : f32
    %190 = vector.shape_cast %51 : vector<16x1xi1> to vector<16x1xi1>
    %191 = vector.broadcast %190 : vector<16x1xi1> to vector<16x128xi1>
    %192 = vector.broadcast %cst_60 : f32 to vector<16x128xf32>
    %193 = arith.select %191, %189, %192 : vector<16x128xi1>, vector<16x128xf32>
    %194 = arith.maximumf %188, %193 : vector<16x128xf32>
    %195 = arith.maximumf %183, %194 : vector<16x128xf32>
    %196 = tpu.concatenate %17, %99, %147, %195 in 1 : vector<16x128xf32>, vector<16x128xf32>, vector<16x128xf32>, vector<16x128xf32> -> vector<16x512xf32>
    %197 = vector.shape_cast %196 : vector<16x512xf32> to vector<1x16x512xf32>
    %cst_61 = arith.constant dense<0.000000e+00> : vector<1x512xf32>
    %198 = vector.multi_reduction <add>, %197, %cst_61 [1] : vector<1x16x512xf32> to vector<1x512xf32>
    %cst_62 = arith.constant dense<0xFF800000> : vector<1x512xf32>
    %199 = vector.multi_reduction <maximumf>, %197, %cst_62 [1] : vector<1x16x512xf32> to vector<1x512xf32>
    %200 = vector.extract_strided_slice %199 {offsets = [0, 0], sizes = [1, 128], strides = [1, 1]} : vector<1x512xf32> to vector<1x128xf32>
    %c8_i32_63 = arith.constant 8 : i32
    %201 = tpu.dynamic_rotate %200 by %c8_i32_63 dim 1 : vector<1x128xf32>, i32 -> vector<1x128xf32>
    %202 = arith.maximumf %200, %201 : vector<1x128xf32>
    %c16_i32_64 = arith.constant 16 : i32
    %203 = tpu.dynamic_rotate %202 by %c16_i32_64 dim 1 : vector<1x128xf32>, i32 -> vector<1x128xf32>
    %204 = arith.maximumf %202, %203 : vector<1x128xf32>
    %c32_i32 = arith.constant 32 : i32
    %205 = tpu.dynamic_rotate %204 by %c32_i32 dim 1 : vector<1x128xf32>, i32 -> vector<1x128xf32>
    %206 = arith.maximumf %204, %205 : vector<1x128xf32>
    %c64_i32 = arith.constant 64 : i32
    %207 = tpu.dynamic_rotate %206 by %c64_i32 dim 1 : vector<1x128xf32>, i32 -> vector<1x128xf32>
    %208 = arith.maximumf %206, %207 : vector<1x128xf32>
    %209 = vector.extract_strided_slice %199 {offsets = [0, 128], sizes = [1, 128], strides = [1, 1]} : vector<1x512xf32> to vector<1x128xf32>
    %c8_i32_65 = arith.constant 8 : i32
    %210 = tpu.dynamic_rotate %209 by %c8_i32_65 dim 1 : vector<1x128xf32>, i32 -> vector<1x128xf32>
    %211 = arith.maximumf %209, %210 : vector<1x128xf32>
    %c16_i32_66 = arith.constant 16 : i32
    %212 = tpu.dynamic_rotate %211 by %c16_i32_66 dim 1 : vector<1x128xf32>, i32 -> vector<1x128xf32>
    %213 = arith.maximumf %211, %212 : vector<1x128xf32>
    %c32_i32_67 = arith.constant 32 : i32
    %214 = tpu.dynamic_rotate %213 by %c32_i32_67 dim 1 : vector<1x128xf32>, i32 -> vector<1x128xf32>
    %215 = arith.maximumf %213, %214 : vector<1x128xf32>
    %c64_i32_68 = arith.constant 64 : i32
    %216 = tpu.dynamic_rotate %215 by %c64_i32_68 dim 1 : vector<1x128xf32>, i32 -> vector<1x128xf32>
    %217 = arith.maximumf %215, %216 : vector<1x128xf32>
    %218 = vector.extract_strided_slice %199 {offsets = [0, 256], sizes = [1, 128], strides = [1, 1]} : vector<1x512xf32> to vector<1x128xf32>
    %c8_i32_69 = arith.constant 8 : i32
    %219 = tpu.dynamic_rotate %218 by %c8_i32_69 dim 1 : vector<1x128xf32>, i32 -> vector<1x128xf32>
    %220 = arith.maximumf %218, %219 : vector<1x128xf32>
    %c16_i32_70 = arith.constant 16 : i32
    %221 = tpu.dynamic_rotate %220 by %c16_i32_70 dim 1 : vector<1x128xf32>, i32 -> vector<1x128xf32>
    %222 = arith.maximumf %220, %221 : vector<1x128xf32>
    %c32_i32_71 = arith.constant 32 : i32
    %223 = tpu.dynamic_rotate %222 by %c32_i32_71 dim 1 : vector<1x128xf32>, i32 -> vector<1x128xf32>
    %224 = arith.maximumf %222, %223 : vector<1x128xf32>
    %c64_i32_72 = arith.constant 64 : i32
    %225 = tpu.dynamic_rotate %224 by %c64_i32_72 dim 1 : vector<1x128xf32>, i32 -> vector<1x128xf32>
    %226 = arith.maximumf %224, %225 : vector<1x128xf32>
    %227 = vector.extract_strided_slice %199 {offsets = [0, 384], sizes = [1, 128], strides = [1, 1]} : vector<1x512xf32> to vector<1x128xf32>
    %c8_i32_73 = arith.constant 8 : i32
    %228 = tpu.dynamic_rotate %227 by %c8_i32_73 dim 1 : vector<1x128xf32>, i32 -> vector<1x128xf32>
    %229 = arith.maximumf %227, %228 : vector<1x128xf32>
    %c16_i32_74 = arith.constant 16 : i32
    %230 = tpu.dynamic_rotate %229 by %c16_i32_74 dim 1 : vector<1x128xf32>, i32 -> vector<1x128xf32>
    %231 = arith.maximumf %229, %230 : vector<1x128xf32>
    %c32_i32_75 = arith.constant 32 : i32
    %232 = tpu.dynamic_rotate %231 by %c32_i32_75 dim 1 : vector<1x128xf32>, i32 -> vector<1x128xf32>
    %233 = arith.maximumf %231, %232 : vector<1x128xf32>
    %c64_i32_76 = arith.constant 64 : i32
    %234 = tpu.dynamic_rotate %233 by %c64_i32_76 dim 1 : vector<1x128xf32>, i32 -> vector<1x128xf32>
    %235 = arith.maximumf %233, %234 : vector<1x128xf32>
    %236 = tpu.concatenate %198, %208, %217, %226, %235 in 1 : vector<1x512xf32>, vector<1x128xf32>, vector<1x128xf32>, vector<1x128xf32>, vector<1x128xf32> -> vector<1x1024xf32>
    %237 = arith.truncf %236 : vector<1x1024xf32> to vector<1x1024xbf16>
    %c0_77 = arith.constant 0 : index
    %c0_78 = arith.constant 0 : index
    %238 = vector.load %arg4[%c0_77, %c0_78] : memref<1024x128xbf16, #tpu.memory_space<vmem>>, vector<1024x128xbf16>
    %cst_79 = arith.constant dense<0.000000e+00> : vector<1x128xf32>
    %239 = tpu.matmul %237, %238, %cst_79 {dimension_numbers = #tpu.dot_dimension_numbers<[1], [0], [0], [1], [0, 0, 1, 1], [], []>} : vector<1x1024xbf16>, vector<1024x128xbf16>, vector<1x128xf32> -> vector<1x128xf32>
    %c0_80 = arith.constant 0 : index
    %c0_81 = arith.constant 0 : index
    %240 = vector.load %arg5[%c0_80, %c0_81] : memref<1x128xf32, #tpu.memory_space<vmem>>, vector<1x128xf32>
    %241 = arith.addf %239, %240 : vector<1x128xf32>
    %cst_82 = arith.constant 0.000000e+00 : f32
    %242 = vector.broadcast %cst_82 : f32 to vector<1x128xf32>
    %243 = arith.maximumf %241, %242 : vector<1x128xf32>
    %244 = math.absf %241 : vector<1x128xf32>
    %cst_83 = arith.constant 0.000000e+00 : f32
    %245 = vector.broadcast %cst_83 : f32 to vector<1x128xf32>
    %246 = arith.subf %245, %244 : vector<1x128xf32>
    %247 = math.exp %246 : vector<1x128xf32>
    %cst_84 = arith.constant 1.000000e+00 : f32
    %248 = vector.broadcast %cst_84 : f32 to vector<1x128xf32>
    %249 = arith.addf %248, %247 : vector<1x128xf32>
    %250 = math.log %249 : vector<1x128xf32>
    %251 = arith.addf %243, %250 : vector<1x128xf32>
    %252 = math.tanh %251 : vector<1x128xf32>
    %253 = arith.mulf %241, %252 : vector<1x128xf32>
    %c0_85 = arith.constant 0 : index
    %c0_86 = arith.constant 0 : index
    %254 = vector.load %arg6[%c0_85, %c0_86] : memref<128x512xf32, #tpu.memory_space<vmem>>, vector<128x512xf32>
    %cst_87 = arith.constant dense<0.000000e+00> : vector<1x512xf32>
    %255 = tpu.matmul %253, %254, %cst_87 {dimension_numbers = #tpu.dot_dimension_numbers<[1], [0], [0], [1], [0, 0, 1, 1], [], []>} : vector<1x128xf32>, vector<128x512xf32>, vector<1x512xf32> -> vector<1x512xf32>
    %c0_88 = arith.constant 0 : index
    %c0_89 = arith.constant 0 : index
    %256 = vector.load %arg7[%c0_88, %c0_89] : memref<1x512xf32, #tpu.memory_space<vmem>>, vector<1x512xf32>
    %257 = arith.addf %255, %256 : vector<1x512xf32>
    %cst_90 = arith.constant 5.000000e-01 : f32
    %258 = vector.broadcast %cst_90 : f32 to vector<1x512xf32>
    %259 = arith.mulf %258, %257 : vector<1x512xf32>
    %260 = math.tanh %259 : vector<1x512xf32>
    %cst_91 = arith.constant 1.000000e+00 : f32
    %261 = vector.broadcast %cst_91 : f32 to vector<1x512xf32>
    %262 = arith.addf %260, %261 : vector<1x512xf32>
    %cst_92 = arith.constant 5.000000e-01 : f32
    %263 = vector.broadcast %cst_92 : f32 to vector<1x512xf32>
    %264 = arith.mulf %263, %262 : vector<1x512xf32>
    %c0_93 = arith.constant 0 : index
    %c0_94 = arith.constant 0 : index
    %265 = vector.load %arg8[%c0_93, %c0_94] : memref<128x512xf32, #tpu.memory_space<vmem>>, vector<128x512xf32>
    %cst_95 = arith.constant dense<0.000000e+00> : vector<1x512xf32>
    %266 = tpu.matmul %253, %265, %cst_95 {dimension_numbers = #tpu.dot_dimension_numbers<[1], [0], [0], [1], [0, 0, 1, 1], [], []>} : vector<1x128xf32>, vector<128x512xf32>, vector<1x512xf32> -> vector<1x512xf32>
    %c0_96 = arith.constant 0 : index
    %c0_97 = arith.constant 0 : index
    %267 = vector.load %arg9[%c0_96, %c0_97] : memref<1x512xf32, #tpu.memory_space<vmem>>, vector<1x512xf32>
    %268 = arith.addf %266, %267 : vector<1x512xf32>
    %269 = vector.shape_cast %264 : vector<1x512xf32> to vector<1x1x512xf32>
    %270 = vector.broadcast %269 : vector<1x1x512xf32> to vector<1x16x512xf32>
    %271 = arith.mulf %197, %270 : vector<1x16x512xf32>
    %272 = vector.shape_cast %268 : vector<1x512xf32> to vector<1x1x512xf32>
    %273 = vector.broadcast %272 : vector<1x1x512xf32> to vector<1x16x512xf32>
    %274 = arith.addf %271, %273 : vector<1x16x512xf32>
    %275 = vector.shape_cast %274 : vector<1x16x512xf32> to vector<16x512xf32>
    %276 = arith.truncf %275 : vector<16x512xf32> to vector<16x512xbf16>
    %c0_98 = arith.constant 0 : index
    %c0_99 = arith.constant 0 : index
    %277 = vector.load %arg10[%c0_98, %c0_99] : memref<512x256xbf16, #tpu.memory_space<vmem>>, vector<512x256xbf16>
    %cst_100 = arith.constant dense<0.000000e+00> : vector<16x256xf32>
    %278 = tpu.matmul %276, %277, %cst_100 {dimension_numbers = #tpu.dot_dimension_numbers<[1], [0], [0], [1], [0, 0, 1, 1], [], []>} : vector<16x512xbf16>, vector<512x256xbf16>, vector<16x256xf32> -> vector<16x256xf32>
    %c0_101 = arith.constant 0 : index
    %c0_102 = arith.constant 0 : index
    %279 = vector.load %arg11[%c0_101, %c0_102] : memref<1x256xf32, #tpu.memory_space<vmem>>, vector<1x256xf32>
    %280 = vector.broadcast %279 : vector<1x256xf32> to vector<16x256xf32>
    %281 = arith.addf %278, %280 : vector<16x256xf32>
    %c0_103 = arith.constant 0 : index
    %c0_104 = arith.constant 0 : index
    %282 = vector.load %arg12[%c0_103, %c0_104] : memref<16x256xf32, #tpu.memory_space<vmem>>, vector<16x256xf32>
    tpu.vector_store %arg12[%c0_103, %c0_104], %281 {strides = array<i32>} : memref<16x256xf32, #tpu.memory_space<vmem>>, vector<16x256xf32>,
    return
  }
  func.func @transform_0(%arg0: i32) -> (i32, i32) {
    %c0_i32 = arith.constant 0 : i32
    %c0_i32_0 = arith.constant 0 : i32
    return %arg0, %c0_i32 : i32, i32
  }
  func.func @transform_1(%arg0: i32) -> (i32, i32) {
    %c0_i32 = arith.constant 0 : i32
    %c0_i32_0 = arith.constant 0 : i32
    %c0_i32_1 = arith.constant 0 : i32
    return %c0_i32, %c0_i32_0 : i32, i32
  }
  func.func @transform_2(%arg0: i32) -> (i32, i32) {
    %c0_i32 = arith.constant 0 : i32
    %c0_i32_0 = arith.constant 0 : i32
    %c0_i32_1 = arith.constant 0 : i32
    return %c0_i32, %c0_i32_0 : i32, i32
  }
  func.func @transform_3(%arg0: i32) -> (i32, i32) {
    %c0_i32 = arith.constant 0 : i32
    %c0_i32_0 = arith.constant 0 : i32
    %c0_i32_1 = arith.constant 0 : i32
    return %c0_i32, %c0_i32_0 : i32, i32
  }
  func.func @transform_4(%arg0: i32) -> (i32, i32) {
    %c0_i32 = arith.constant 0 : i32
    %c0_i32_0 = arith.constant 0 : i32
    %c0_i32_1 = arith.constant 0 : i32
    return %c0_i32, %c0_i32_0 : i32, i32
  }
  func.func @transform_5(%arg0: i32) -> (i32, i32) {
    %c0_i32 = arith.constant 0 : i32
    %c0_i32_0 = arith.constant 0 : i32
    %c0_i32_1 = arith.constant 0 : i32
    return %c0_i32, %c0_i32_0 : i32, i32
  }
  func.func @transform_6(%arg0: i32) -> (i32, i32) {
    %c0_i32 = arith.constant 0 : i32
    %c0_i32_0 = arith.constant 0 : i32
    %c0_i32_1 = arith.constant 0 : i32
    return %c0_i32, %c0_i32_0 : i32, i32
  }
  func.func @transform_7(%arg0: i32) -> (i32, i32) {
    %c0_i32 = arith.constant 0 : i32
    %c0_i32_0 = arith.constant 0 : i32
    %c0_i32_1 = arith.constant 0 : i32
    return %c0_i32, %c0_i32_0 : i32, i32
  }
  func.func @transform_8(%arg0: i32) -> (i32, i32) {
    %c0_i32 = arith.constant 0 : i32
    %c0_i32_0 = arith.constant 0 : i32
    %c0_i32_1 = arith.constant 0 : i32
    return %c0_i32, %c0_i32_0 : i32, i32
  }
  func.func @transform_9(%arg0: i32) -> (i32, i32) {
    %c0_i32 = arith.constant 0 : i32
    %c0_i32_0 = arith.constant 0 : i32
    %c0_i32_1 = arith.constant 0 : i32
    return %c0_i32, %c0_i32_0 : i32, i32
  }
  func.func @transform_10(%arg0: i32) -> (i32, i32) {
    %c0_i32 = arith.constant 0 : i32
    %c0_i32_0 = arith.constant 0 : i32
    %c0_i32_1 = arith.constant 0 : i32
    return %c0_i32, %c0_i32_0 : i32, i32
  }
  func.func @transform_11(%arg0: i32) -> (i32, i32) {
    %c0_i32 = arith.constant 0 : i32
    %c0_i32_0 = arith.constant 0 : i32
    return %arg0, %c0_i32 : i32, i32
  }
}

</mosaic_0001>

<bundles_post_ra>
// kernel: _lambda_.1
= control target key start
LH: loop header
LB: loop body
LE: loop exit
PB: predicated region body
PF: predicated region fallthrough
CT: control target
= control target key end

     0   :  { %s3338_s17 = smov 0   ;;  %s4491_s0 = inlined_call_operand.vmem [shape: bf16[32,256], index: 0, kind: input, shape index: {}]   ;;  %s4492_s1 = inlined_call_operand.vmem [shape: bf16[256,128], index: 1, kind: input, shape index: {}]   ;;  %s4493_s2 = inlined_call_operand.vmem [shape: f32[1,128], index: 2, kind: input, shape index: {}]   ;;  %s4494_s3 = inlined_call_operand.vmem [shape: bf16[1024,128], index: 3, kind: input, shape index: {}]   ;;  %s4495_s4 = inlined_call_operand.vmem [shape: f32[1,128], index: 4, kind: input, shape index: {}]   ;;  %s4496_s5 = inlined_call_operand.vmem [shape: f32[128,512], index: 5, kind: input, shape index: {}]   ;;  %s4497_s6 = inlined_call_operand.vmem [shape: f32[1,512], index: 6, kind: input, shape index: {}]   ;;  %s4498_s7 = inlined_call_operand.vmem [shape: f32[128,512], index: 7, kind: input, shape index: {}]   ;;  %s4499_s8 = inlined_call_operand.vmem [shape: f32[1,512], index: 8, kind: input, shape index: {}]   ;;  %s4500_s9 = inlined_call_operand.vmem [shape: bf16[512,256], index: 9, kind: input, shape index: {}]   ;;  %s4501_s10 = inlined_call_operand.vmem [shape: f32[1,256], index: 10, kind: input, shape index: {}]   ;;  %s4502_s11 = inlined_call_operand.vmem [shape: f32[32,256], index: 11, kind: output, shape index: {}]  }
   0x1 LB: > { %s2731_s18 = sadd.s32 4294967295, %s3269_s17   ;;  %p2735_p0 = scmp.ge.s32.totalorder %s3269_s17, 1  ;;  %s3269_s17 = sphi %s3338_s17, %s21_s17  }
   0x2   : > { %p339_p1 = scmp.lt.s32.totalorder %s3269_s17, 3 }
   0x4   : > { %p340_p2 = pnand %p2735_p0, %p339_p1 }
   0x5   : > { %s2736_s21 = sshll.u32 (!%p340_p2), %s2731_s18, 1  ;;  %s3272_s25 = smov (!%p340_p2), 8  }
   0x6   : > { %343 = sbr.rel (%p340_p2) target bundleno = 1926 (0x786), region = 64  ;;  %p382_p3 = scmp.lt.s32.totalorder (!%p340_p2), %s2736_s21, 3 }
   0x7   : > { %s3273_s30 = smov (!%p340_p2), 16   ;;  %s3274_s22 = smov (!%p340_p2), 112  }
   0xb   : > { %v3058_v0 = vld [vmem:[%s4492_s1 + $0x78] sm:$0xff]   ;;  %v3060_v2 = vld [vmem:[%s4492_s1 + $0x70] sm:$0xff]   ;;  %v3062_v4 = vld [vmem:[%s4492_s1 + $0x68] sm:$0xff]   ;;  %s4512_s21 = smov (!%p382_p3, %s2736_s21), 3 }
   0xc   : > { %v3059_v1 = vld [vmem:[%s4492_s1 + $0x38] sm:$0xff]   ;;  %2893 = vmatprep.subr.bf16.mxu0 %v3058_v0  ;;  %v3061_v3 = vld [vmem:[%s4492_s1 + $0x30] sm:$0xff]   ;;  %v3063_v5 = vld [vmem:[%s4492_s1 + $0x28] sm:$0xff]   ;;  %s2891_s18 = sshll.u32 %s4512_s21, 3  ;;  %s2892_s26 = sshll.u32 %s4512_s21, 4 }
   0xd   : > { %2894 = vmatpush3.bf16.msra.mxu0 %v3059_v1  ;;  %v3064_v6 = vld [vmem:[%s4492_s1 + $0x60] sm:$0xff]   ;;  %v3066_v8 = vld [vmem:[%s4492_s1 + $0x58] sm:$0xff]   ;;  %s386_s24 = scalar_lea.vmem %s4491_s0, %s2891_s18  ;;  %v3068_v10 = vld [vmem:[%s4492_s1 + $0x50] sm:$0xff]   ;;  %v606_v1 = vlaneseq  ;;  %s3275_s18 = smov 32  }
   0xe   : > { %2895 = vmatprep.subr.bf16.mxu0 %v3060_v2  ;;  %v3065_v7 = vld [vmem:[%s4492_s1 + $0x20] sm:$0xff]   ;;  %v3067_v9 = vld [vmem:[%s4492_s1 + $0x18] sm:$0xff]   ;;  %v3069_v11 = vld [vmem:[%s4492_s1 + $0x10] sm:$0xff]  }
   0xf   : > { %v3076_v12 = vld [vmem:[%s386_s24 + $0x4] ss:$8 sps:$4 sm:$0xff]   ;;  %v3074_v17 = vld [vmem:[%s386_s24] ss:$8 sps:$4 sm:$0xff]   ;;  %s3271_s24 = smov 120   ;;  %v3077_v48 = vld [vmem:[%s4494_s3 + $0x78] sm:$0xff]  }
  0x10   : > { %v3070_v13 = vld [vmem:[%s4492_s1 + $0x48] sm:$0xff]   ;;  %575 = vmatprep.mubr.bf16.mxu0 %v3076_v12  ;;  %v3072_v15 = vld [vmem:[%s4492_s1 + $0x40] sm:$0xff]   ;;  %v3078_v50 = vld [vmem:[%s4494_s3 + $0x38] sm:$0xff]   ;;  %2915 = vmatprep.subr.bf16.mxu1 %v3077_v48  ;;  %v3471_v2 = vand.u32 127, %v606_v1 }
  0x11   : > { %2896 = vmatpush3.bf16.msra.mxu0 %v3061_v3  ;;  %v3071_v14 = vld [vmem:[%s4492_s1 + $0x8] sm:$0xff]   ;;  %v3073_v16 = vld [vmem:[%s4492_s1] sm:$0xff]   ;;  %2916 = vmatpush3.bf16.msra.mxu1 %v3078_v50  ;;  %v3079_v51 = vld [vmem:[%s4494_s3 + $0x70] sm:$0xff]  }
  0x12   : > { %2897 = vmatprep.subr.bf16.mxu0 %v3062_v4  ;;  %v2742_v19 = vld [vmem:[%s4493_s2] ss:$0 sm:$0xff]  ;;  %v3080_v52 = vld [vmem:[%s4494_s3 + $0x30] sm:$0xff]   ;;  %2917 = vmatprep.subr.bf16.mxu1 %v3079_v51  ;;  %v3081_v53 = vld [vmem:[%s4494_s3 + $0x68] sm:$0xff]   ;;  %vm637_vm0 = vcmp.lt.s32.totalorder %v3471_v2, 120  ;;  %vm635_vm1 = vcmp.ge.s32.totalorder %v3471_v2, 8 }
  0x13   : > { %v3082_v54 = vld [vmem:[%s4494_s3 + $0x28] sm:$0xff]   ;;  %v3083_v55 = vld [vmem:[%s4494_s3 + $0x60] sm:$0xff]   ;;  %v3085_v57 = vld [vmem:[%s4494_s3 + $0x58] sm:$0xff]   ;;  %vm636_vm2 = vcmp.ge.s32.totalorder %v3471_v2, 16  ;;  %vm638_vm3 = vcmp.lt.s32.totalorder %v3471_v2, 112 }
  0x14   : > { %v3084_v56 = vld [vmem:[%s4494_s3 + $0x20] sm:$0xff]   ;;  %v3086_v58 = vld [vmem:[%s4494_s3 + $0x18] sm:$0xff]   ;;  %v3087_v59 = vld [vmem:[%s4494_s3 + $0x50] sm:$0xff]  }
  0x15   : > { %2898 = vmatpush3.bf16.msra.mxu0 %v3063_v5  ;;  %2918 = vmatpush3.bf16.msra.mxu1 %v3080_v52  ;;  %v3088_v60 = vld [vmem:[%s4494_s3 + $0x10] sm:$0xff]   ;;  %v3089_v61 = vld [vmem:[%s4494_s3 + $0x48] sm:$0xff]   ;;  %v3091_v63 = vld [vmem:[%s4494_s3 + $0x40] sm:$0xff]   ;;  %v3473_v5 = vshrl.u32 %v606_v1, 7 }
  0x16   : > { %2899 = vmatprep.subr.bf16.mxu0 %v3064_v6  ;;  %2919 = vmatprep.subr.bf16.mxu1 %v3081_v53  ;;  %v3090_v62 = vld [vmem:[%s4494_s3 + $0x8] sm:$0xff]   ;;  %v3092_v0 = vld [vmem:[%s4494_s3] sm:$0xff]  }
  0x17   : > { %v610_v12 = vadd.s32 8, %v3473_v5  ;;  %vm689_vm4 = vcmp.lt.s32.totalorder %v3473_v5, 1  ;;  %vm700_vm7 = vcmp.lt.s32.totalorder %v3473_v5, 7  ;;  %vm715_vm8 = vcmp.lt.s32.totalorder %v3473_v5, 2 }
  0x18   : > { %vm726_vm11 = vcmp.lt.s32.totalorder %v3473_v5, 6 }
  0x19   : > { %2900 = vmatpush3.bf16.msra.mxu0 %v3065_v7  ;;  %2920 = vmatpush3.bf16.msra.mxu1 %v3082_v54 }
  0x1a   : > { %2901 = vmatprep.subr.bf16.mxu0 %v3066_v8  ;;  %2921 = vmatprep.subr.bf16.mxu1 %v3083_v55 }
  0x1d   : > { %2902 = vmatpush3.bf16.msra.mxu0 %v3067_v9  ;;  %2922 = vmatpush3.bf16.msra.mxu1 %v3084_v56 }
  0x1e   : > { %2903 = vmatprep.subr.bf16.mxu0 %v3068_v10  ;;  %2923 = vmatprep.subr.bf16.mxu1 %v3085_v57 }
  0x21   : > { %2904 = vmatpush3.bf16.msra.mxu0 %v3069_v11  ;;  %2924 = vmatpush3.bf16.msra.mxu1 %v3086_v58 }
  0x22   : > { %2905 = vmatprep.subr.bf16.mxu0 %v3070_v13  ;;  %2925 = vmatprep.subr.bf16.mxu1 %v3087_v59 }
  0x25   : > { %2906 = vmatpush3.bf16.msra.mxu0 %v3071_v14  ;;  %2926 = vmatpush3.bf16.msra.mxu1 %v3088_v60 }
  0x26   : > { %2907 = vmatprep.subr.bf16.mxu0 %v3072_v15  ;;  %2927 = vmatprep.subr.bf16.mxu1 %v3089_v61 }
  0x29   : > { %2908 = vmatpush3.bf16.msra.mxu0 %v3073_v16  ;;  %2928 = vmatpush3.bf16.msra.mxu1 %v3090_v62 }
  0x2a   : > { %2929 = vmatprep.subr.bf16.mxu1 %v3091_v63 }
  0x2c   : > { %576 = vmatmul.mubr.bf16.vlgmr.msra.gmra.mxu0 %v3074_v17 }
  0x2d   : > { %2930 = vmatpush3.bf16.msra.mxu1 %v3092_v0 }
  0xec   : > { %v2909_v18 = vpop.f32.mrf.mxu0 }
  0xee   : > { %v2910_v20 = vpop.f32.mrf.mxu0 }
  0xef   : > { %v2911_v21 = vadd.f32 %v2910_v20, %v2909_v18  ;;  %v615_v18 = vand.u32 15, %v3473_v5 }
  0xf0   : > { %v2912_v22 = vpop.f32.mrf.mxu0 }
  0xf1   : > { %v578_v23 = vadd.f32 %v2911_v21, %v2742_v19  ;;  %vm3502_vm5 = vcmp.ge.s32.totalorder %v615_v18, 1  ;;  %vm3512_vm9 = vcmp.ge.s32.totalorder %v615_v18, 2 }
  0xf2   : > { %v2913_v24 = vpop.f32.mrf.mxu0 }
  0xf3   : > { %v586_v25 = vand.u32 2147483647, %v578_v23  ;;  %v2914_v26 = vadd.f32 %v2913_v24, %v2912_v22  ;;  %v584_v38 = vmax.f32 %v578_v23, 0.0 }
  0xf5   : > { %v588_v27 = vsub.f32 0.0, %v586_v25  ;;  %v581_v28 = vadd.f32 %v2914_v26, %v2742_v19  ;;  %v622_v19 = vand.u32 15, %v610_v12 }
  0xf7   : > { %v590_v29 = vmul.f32 1.442695, %v588_v27  ;;  %v587_v30 = vand.u32 2147483647, %v581_v28  ;;  %v585_v42 = vmax.f32 %v581_v28, 0.0  ;;  %vm3506_vm6 = vcmp.lt.s32.totalorder %v622_v19, 15 }
  0xf8   : > { %vm3516_vm10 = vcmp.lt.s32.totalorder %v622_v19, 14 }
  0xf9   : > { %3237 = vpow2.f32 %v590_v29  ;;  %v589_v31 = vsub.f32 0.0, %v587_v30 }
  0xfb   : > { %v592_v32 = vmul.f32 1.442695, %v589_v31 }
  0xfd   : > { %3239 = vpow2.f32 %v592_v32 }
 0x106   : > { %v3238_v33 = vpop.eup %3237 }
 0x107   : > { %v594_v34 = vadd.f32 1.0, %v3238_v33 }
 0x109   : > { %3241 = vlog2.f32 %v594_v34 }
 0x10a   : > { %v3240_v35 = vpop.eup %3239 }
 0x10b   : > { %v595_v36 = vadd.f32 1.0, %v3240_v35 }
 0x10d   : > { %3243 = vlog2.f32 %v595_v36 }
 0x116   : > { %v3242_v37 = vpop.eup %3241 }
 0x117   : > { %v597_v39 = vmul.f32 0.6931472, %v3242_v37 }
 0x119   : > { %v600_v40 = vadd.f32 %v597_v39, %v584_v38 }
 0x11a   : > { %v3244_v41 = vpop.eup %3243 }
 0x11b   : > { %3245 = vtanh.f32 %v600_v40  ;;  %v599_v43 = vmul.f32 0.6931472, %v3244_v41 }
 0x11d   : > { %v601_v44 = vadd.f32 %v599_v43, %v585_v42 }
 0x11f   : > { %3247 = vtanh.f32 %v601_v44 }
 0x128   : > { %v3246_v45 = vpop.eup %3245 }
 0x129   : > { %v3403_v46 = vmul.f32 %v3246_v45, %v578_v23 }
 0x12b   : > { %655 = vrot.lane.b32.xlu1 %v3403_v46, %s3271_s24  ;;  %647 = vrot.lane.b32.xlu0 %v3403_v46, %s3272_s25 }
 0x12c   : > { %v3248_v47 = vpop.eup %3247 }
 0x12d   : > { %v3412_v49 = vmul.f32 %v3248_v47, %v581_v28 }
 0x12f   : > { %657 = vrot.lane.b32.xlu1 %v3412_v49, %s3271_s24  ;;  %667 = vrot.lane.b32.xlu0 %v3403_v46, %s3273_s30  ;;  %v867_v31 = vadd.f32 %v3412_v49, %v3403_v46 }
 0x131   : > { %v868_v44 = vrot.slane %v867_v31, 4 }
 0x133   : > { %669 = vrot.lane.b32.xlu1 %v3412_v49, %s3273_s30  ;;  %649 = vrot.lane.b32.xlu0 %v3412_v49, %s3272_s25  ;;  %v869_v60 = vadd.f32 %v868_v44, %v867_v31 }
 0x137   : > { %677 = vrot.lane.b32.xlu1 %v3412_v49, %s3274_s22  ;;  %675 = vrot.lane.b32.xlu0 %v3403_v46, %s3274_s22 }
 0x19d   : > { %v656_v3 = vpop.permute.xlu1 %655  ;;  %v648_v4 = vpop.permute.xlu0 %647 }
 0x19e   : > { %v661_v8 = vsel %vm637_vm0, %v656_v3, -inf  ;;  %v653_v9 = vsel %vm635_vm1, %v648_v4, -inf }
 0x19f   : > { %v663_v15 = vmax.f32 %v653_v9, %v661_v8 }
 0x1a1   : > { %v658_v6 = vpop.permute.xlu1 %657  ;;  %v668_v7 = vpop.permute.xlu0 %667  ;;  %v665_v25 = vmax.f32 %v3403_v46, %v663_v15 }
 0x1a2   : > { %v662_v13 = vsel %vm637_vm0, %v658_v6, -inf  ;;  %v673_v21 = vsel %vm636_vm2, %v668_v7, -inf  ;;  %v870_v6 = vrot.slane %v869_v60, 2 }
 0x1a4   : > { %v871_v9 = vadd.f32 %v870_v6, %v869_v60 }
 0x1a5   : > { %v670_v10 = vpop.permute.xlu1 %669  ;;  %v650_v11 = vpop.permute.xlu0 %649 }
 0x1a6   : > { %v654_v14 = vsel %vm635_vm1, %v650_v11, -inf  ;;  %v674_v22 = vsel %vm636_vm2, %v670_v10, -inf  ;;  %v872_v12 = vrot.slane %v871_v9, 1 }
 0x1a7   : > { %v664_v16 = vmax.f32 %v654_v14, %v662_v13 }
 0x1a8   : > { %v873_v15 = vadd.f32 %v872_v12, %v871_v9 }
 0x1a9   : > { %v678_v17 = vpop.permute.xlu1 %677  ;;  %v676_v20 = vpop.permute.xlu0 %675  ;;  %v666_v26 = vmax.f32 %v3412_v49, %v664_v16 }
 0x1aa   : > { %v682_v23 = vsel %vm638_vm3, %v678_v17, -inf  ;;  %v681_v24 = vsel %vm638_vm3, %v676_v20, -inf  ;;  %v971_v18 = vpack.c.bf16 %v873_v15, %v873_v15 }
 0x1ab   : > { %v684_v27 = vmax.f32 %v674_v22, %v682_v23  ;;  %v683_v28 = vmax.f32 %v673_v21, %v681_v24 }
 0x1ad   : > { %v686_v29 = vmax.f32 %v666_v26, %v684_v27  ;;  %v685_v30 = vmax.f32 %v665_v25, %v683_v28 }
 0x1af   : > { %v688_v34 = vrot.slane %v686_v29, 7  ;;  %v699_v35 = vrot.slane %v686_v29, 1  ;;  %v714_v36 = vrot.slane %v686_v29, 6  ;;  %v725_v37 = vrot.slane %v686_v29, 2 }
 0x1b0   : > { %v687_v38 = vrot.slane %v685_v30, 7  ;;  %v698_v39 = vrot.slane %v685_v30, 1  ;;  %v713_v40 = vrot.slane %v685_v30, 6  ;;  %v724_v41 = vrot.slane %v685_v30, 2 }
 0x1b2   : > { %v690_v45 = vsel %vm689_vm4, %v687_v38, %v688_v34  ;;  %v691_v47 = vsel %vm689_vm4, %v688_v34, %v687_v38  ;;  %v701_v48 = vsel %vm700_vm7, %v698_v39, %v699_v35  ;;  %v702_v50 = vsel %vm700_vm7, %v699_v35, %v698_v39 }
 0x1b3   : > { %v696_v51 = vsel %vm3502_vm5, %v691_v47, -inf  ;;  %v708_v52 = vsel %vm3506_vm6, %v702_v50, -inf  ;;  %v716_v53 = vsel %vm715_vm8, %v713_v40, %v714_v36  ;;  %v717_v54 = vsel %vm715_vm8, %v714_v36, %v713_v40 }
 0x1b4   : > { %v709_v55 = vmax.f32 %v696_v51, %v701_v48  ;;  %v710_v56 = vmax.f32 %v690_v45, %v708_v52  ;;  %v722_v57 = vsel %vm3512_vm9, %v717_v54, -inf  ;;  %v727_v58 = vsel %vm726_vm11, %v724_v41, %v725_v37 }
 0x1b5   : > { %v728_v59 = vsel %vm726_vm11, %v725_v37, %v724_v41  ;;  %v735_v0 = vmax.f32 %v722_v57, %v727_v58  ;;  %v895_v48 = vmax.f32 %v3403_v46, %v3412_v49 }
 0x1b6   : > { %v711_v61 = vmax.f32 %v685_v30, %v709_v55  ;;  %v712_v62 = vmax.f32 %v686_v29, %v710_v56  ;;  %v734_v63 = vsel %vm3516_vm10, %v728_v59, -inf }
 0x1b7   : > { %v736_v1 = vmax.f32 %v716_v53, %v734_v63  ;;  %v896_v60 = vrot.slane %v895_v48, 4 }
 0x1b8   : > { %v3545_v3 = vmax.f32 %v711_v61, %v735_v0 }
 0x1b9   : > { %v3547_v4 = vmax.f32 %v712_v62, %v736_v1  ;;  %v897_v15 = vmax.f32 %v895_v48, %v896_v60  ;;  %v3104_v48 = vld [vmem:[%s4494_s3 + $0x90] sm:$0xff]  }
 0x1ba   : > { %739 = vrot.lane.b32.xlu0 %v3545_v3, %s3272_s25 }
 0x1bb   : > { %741 = vrot.lane.b32.xlu1 %v3547_v4, %s3272_s25  ;;  %v874_v7 = vadd.f32 %v3547_v4, %v3545_v3  ;;  %v902_v34 = vmax.f32 %v3545_v3, %v3547_v4 }
 0x1bd   : > { %v875_v8 = vrot.slane %v874_v7, 4  ;;  %v903_v50 = vrot.slane %v902_v34, 4 }
 0x1be   : > { %745 = vrot.lane.b32.xlu0 %v3545_v3, %s3271_s24 }
 0x1bf   : > { %747 = vrot.lane.b32.xlu1 %v3547_v4, %s3271_s24  ;;  %v876_v10 = vadd.f32 %v875_v8, %v874_v7  ;;  %v904_v61 = vmax.f32 %v902_v34, %v903_v50  ;;  %v3105_v50 = vld [vmem:[%s4494_s3 + $0xc8] sm:$0xff]  }
 0x1c1   : > { %v877_v11 = vrot.slane %v876_v10, 2 }
 0x1c2   : > { %755 = vrot.lane.b32.xlu0 %v3545_v3, %s3273_s30 }
 0x1c3   : > { %757 = vrot.lane.b32.xlu1 %v3547_v4, %s3273_s30  ;;  %v878_v13 = vadd.f32 %v877_v11, %v876_v10 }
 0x1c5   : > { %v879_v14 = vrot.slane %v878_v13, 1 }
 0x1c6   : > { %761 = vrot.lane.b32.xlu0 %v3545_v3, %s3274_s22 }
 0x1c7   : > { %763 = vrot.lane.b32.xlu1 %v3547_v4, %s3274_s22  ;;  %v880_v16 = vadd.f32 %v879_v14, %v878_v13 }
 0x1c9   : > { %v972_v17 = vpack.c.bf16 %v880_v16, %v880_v16 }
 0x1cb   : > { %1524 = vmatprep.mubr.bf16.mxu1 %v972_v17 }
 0x1cc   : > { %1525 = vmatmul.mubr.bf16.vlgmr.msra.gmra.mxu1 %v971_v18 }
 0x22c   : > { %v740_v19 = vpop.permute.xlu0 %739 }
 0x22d   : > { %v742_v20 = vpop.permute.xlu1 %741  ;;  %v743_v26 = vsel %vm635_vm1, %v740_v19, -inf }
 0x22e   : > { %v744_v28 = vsel %vm635_vm1, %v742_v20, -inf }
 0x230   : > { %v746_v21 = vpop.permute.xlu0 %745 }
 0x231   : > { %v748_v22 = vpop.permute.xlu1 %747  ;;  %v749_v23 = vsel %vm637_vm0, %v746_v21, -inf }
 0x232   : > { %v750_v24 = vsel %vm637_vm0, %v748_v22, -inf  ;;  %v751_v29 = vmax.f32 %v743_v26, %v749_v23  ;;  %v905_v22 = vrot.slane %v904_v61, 2  ;;  %v3094_v26 = vld [vmem:[%s4494_s3 + $0xb8] sm:$0xff]  }
 0x233   : > { %v752_v30 = vmax.f32 %v744_v28, %v750_v24  ;;  %v898_v24 = vrot.slane %v897_v15, 2 }
 0x234   : > { %v756_v25 = vpop.permute.xlu0 %755  ;;  %v753_v38 = vmax.f32 %v3545_v3, %v751_v29  ;;  %v3095_v29 = vld [vmem:[%s4494_s3 + $0xf0] sm:$0xff]  }
 0x235   : > { %v758_v27 = vpop.permute.xlu1 %757  ;;  %v759_v35 = vsel %vm636_vm2, %v756_v25, -inf  ;;  %v754_v44 = vmax.f32 %v3547_v4, %v752_v30  ;;  %v3093_v25 = vld [vmem:[%s4494_s3 + $0xf8] sm:$0xff]   ;;  %v899_v28 = vmax.f32 %v897_v15, %v898_v24  ;;  %v3096_v30 = vld [vmem:[%s4494_s3 + $0xb0] sm:$0xff]  }
 0x236   : > { %v760_v39 = vsel %vm636_vm2, %v758_v27, -inf  ;;  %v906_v27 = vmax.f32 %v904_v61, %v905_v22  ;;  %2937 = vmatprep.subr.bf16.mxu0 %v3093_v25 }
 0x237   : > { %2938 = vmatpush3.bf16.msra.mxu0 %v3094_v26  ;;  %v900_v34 = vrot.slane %v899_v28, 1 }
 0x238   : > { %v762_v31 = vpop.permute.xlu0 %761  ;;  %2939 = vmatprep.subr.bf16.mxu0 %v3095_v29 }
 0x239   : > { %v765_v36 = vsel %vm638_vm3, %v762_v31, -inf  ;;  %v764_v37 = vpop.permute.xlu1 %763  ;;  %v907_v31 = vrot.slane %v906_v27, 1 }
 0x23a   : > { %v767_v40 = vmax.f32 %v759_v35, %v765_v36  ;;  %v766_v41 = vsel %vm638_vm3, %v764_v37, -inf  ;;  %v3097_v35 = vld [vmem:[%s4494_s3 + $0xe8] sm:$0xff]  }
 0x23b   : > { %v768_v45 = vmax.f32 %v760_v39, %v766_v41  ;;  %2940 = vmatpush3.bf16.msra.mxu0 %v3096_v30  ;;  %v3098_v36 = vld [vmem:[%s4494_s3 + $0xa8] sm:$0xff]   ;;  %v3647_v37 = vmax.f32 %v906_v27, %v907_v31  ;;  %v3100_v39 = vld [vmem:[%s4494_s3 + $0xa0] sm:$0xff]   ;;  %v3101_v41 = vld [vmem:[%s4494_s3 + $0xd8] sm:$0xff]  }
 0x23c   : > { %v769_v47 = vmax.f32 %v753_v38, %v767_v40  ;;  %2941 = vmatprep.subr.bf16.mxu0 %v3097_v35  ;;  %v3099_v38 = vld [vmem:[%s4494_s3 + $0xe0] sm:$0xff]   ;;  %v3657_v40 = vmax.f32 %v899_v28, %v900_v34 }
 0x23d   : > { %v770_v51 = vmax.f32 %v754_v44, %v768_v45  ;;  %v3102_v45 = vld [vmem:[%s4494_s3 + $0x98] sm:$0xff]  }
 0x23e   : > { %v771_v52 = vrot.slane %v769_v47, 7  ;;  %v777_v53 = vrot.slane %v769_v47, 1  ;;  %v787_v54 = vrot.slane %v769_v47, 6  ;;  %v793_v55 = vrot.slane %v769_v47, 2 }
 0x23f   : > { %v772_v56 = vrot.slane %v770_v51, 7  ;;  %v778_v57 = vrot.slane %v770_v51, 1  ;;  %v788_v58 = vrot.slane %v770_v51, 6  ;;  %v794_v59 = vrot.slane %v770_v51, 2  ;;  %2942 = vmatpush3.bf16.msra.mxu0 %v3098_v36 }
 0x240   : > { %2943 = vmatprep.subr.bf16.mxu0 %v3099_v38  ;;  %v3018_v44 = vpack.i.bf16 %v3657_v40, %v3647_v37 }
 0x241   : > { %v773_v62 = vsel %vm689_vm4, %v771_v52, %v772_v56  ;;  %v774_v63 = vsel %vm689_vm4, %v772_v56, %v771_v52  ;;  %v779_v0 = vsel %vm700_vm7, %v777_v53, %v778_v57  ;;  %v780_v1 = vsel %vm700_vm7, %v778_v57, %v777_v53  ;;  %v3107_v52 = vld [vmem:[%s4494_s3 + $0xc0] sm:$0xff]  }
 0x242   : > { %v775_v6 = vsel %vm3502_vm5, %v774_v63, -inf  ;;  %v782_v7 = vsel %vm3506_vm6, %v780_v1, -inf  ;;  %v789_v8 = vsel %vm715_vm8, %v787_v54, %v788_v58  ;;  %v790_v9 = vsel %vm715_vm8, %v788_v58, %v787_v54  ;;  %v3108_v53 = vld [vmem:[%s4494_s3 + $0x80] sm:$0xff]  }
 0x243   : > { %v783_v10 = vmax.f32 %v775_v6, %v779_v0  ;;  %v784_v11 = vmax.f32 %v773_v62, %v782_v7  ;;  %v791_v12 = vsel %vm3512_vm9, %v790_v9, -inf  ;;  %v795_v13 = vsel %vm726_vm11, %v793_v55, %v794_v59  ;;  %2944 = vmatpush3.bf16.msra.mxu0 %v3100_v39 }
 0x244   : > { %v796_v14 = vsel %vm726_vm11, %v794_v59, %v793_v55  ;;  %v799_v19 = vmax.f32 %v791_v12, %v795_v13  ;;  %2945 = vmatprep.subr.bf16.mxu0 %v3101_v41 }
 0x245   : > { %v785_v16 = vmax.f32 %v769_v47, %v783_v10  ;;  %v786_v17 = vmax.f32 %v770_v51, %v784_v11  ;;  %v798_v18 = vsel %vm3516_vm10, %v796_v14, -inf  ;;  %v3103_v47 = vld [vmem:[%s4494_s3 + $0xd0] sm:$0xff]   ;;  %v3106_v51 = vld [vmem:[%s4494_s3 + $0x88] sm:$0xff]  }
 0x246   : > { %v800_v20 = vmax.f32 %v789_v8, %v798_v18 }
 0x247   : > { %v3613_v21 = vmax.f32 %v785_v16, %v799_v19  ;;  %2946 = vmatpush3.bf16.msra.mxu0 %v3102_v45 }
 0x248   : > { %v3615_v23 = vmax.f32 %v786_v17, %v800_v20  ;;  %2947 = vmatprep.subr.bf16.mxu0 %v3103_v47 }
 0x249   : > { %803 = vrot.lane.b32.xlu0 %v3613_v21, %s3272_s25 }
 0x24a   : > { %805 = vrot.lane.b32.xlu1 %v3615_v23, %s3272_s25  ;;  %v909_v25 = vmax.f32 %v3613_v21, %v3615_v23  ;;  %v881_v26 = vadd.f32 %v3615_v23, %v3613_v21 }
 0x24b   : > { %2948 = vmatpush3.bf16.msra.mxu0 %v3104_v48 }
 0x24c   : > { %2949 = vmatprep.subr.bf16.mxu0 %v3105_v50  ;;  %v910_v45 = vrot.slane %v909_v25, 4  ;;  %v882_v47 = vrot.slane %v881_v26, 4 }
 0x24d   : > { %809 = vrot.lane.b32.xlu0 %v3613_v21, %s3271_s24 }
 0x24e   : > { %811 = vrot.lane.b32.xlu1 %v3615_v23, %s3271_s24 }
 0x24f   : > { %2950 = vmatpush3.bf16.msra.mxu0 %v3106_v51 }
 0x250   : > { %2951 = vmatprep.subr.bf16.mxu0 %v3107_v52 }
 0x251   : > { %819 = vrot.lane.b32.xlu0 %v3613_v21, %s3273_s30 }
 0x252   : > { %821 = vrot.lane.b32.xlu1 %v3615_v23, %s3273_s30 }
 0x253   : > { %2952 = vmatpush3.bf16.msra.mxu0 %v3108_v53 }
 0x255   : > { %825 = vrot.lane.b32.xlu0 %v3613_v21, %s3274_s22 }
 0x256   : > { %827 = vrot.lane.b32.xlu1 %v3615_v23, %s3274_s22 }
 0x259   : > { %3019 = vrot.lane.b32.xlu0 %v3018_v44, %s3272_s25 }
 0x28c   : > { %v2931_v54 = vpop.f32.mrf.mxu1 }
 0x28e   : > { %v2932_v55 = vpop.f32.mrf.mxu1 }
 0x28f   : > { %v3688_v56 = vadd.f32 %v2932_v55, %v2931_v54 }
 0x290   : > { %v2934_v57 = vpop.f32.mrf.mxu1 }
 0x292   : > { %v2935_v58 = vpop.f32.mrf.mxu1 }
 0x2bb   : > { %v804_v59 = vpop.permute.xlu0 %803 }
 0x2bc   : > { %v806_v60 = vpop.permute.xlu1 %805  ;;  %v807_v6 = vsel %vm635_vm1, %v804_v59, -inf }
 0x2bd   : > { %v808_v8 = vsel %vm635_vm1, %v806_v60, -inf  ;;  %v883_v60 = vadd.f32 %v882_v47, %v881_v26 }
 0x2bf   : > { %v810_v61 = vpop.permute.xlu0 %809 }
 0x2c0   : > { %v812_v62 = vpop.permute.xlu1 %811  ;;  %v813_v63 = vsel %vm637_vm0, %v810_v61, -inf }
 0x2c1   : > { %v814_v0 = vsel %vm637_vm0, %v812_v62, -inf  ;;  %v815_v9 = vmax.f32 %v807_v6, %v813_v63  ;;  %v911_v6 = vmax.f32 %v909_v25, %v910_v45 }
 0x2c2   : > { %v816_v10 = vmax.f32 %v808_v8, %v814_v0 }
 0x2c3   : > { %v820_v1 = vpop.permute.xlu0 %819  ;;  %v817_v15 = vmax.f32 %v3613_v21, %v815_v9  ;;  %v884_v9 = vrot.slane %v883_v60, 2 }
 0x2c4   : > { %v822_v7 = vpop.permute.xlu1 %821  ;;  %v823_v12 = vsel %vm636_vm2, %v820_v1, -inf  ;;  %v818_v19 = vmax.f32 %v3615_v23, %v816_v10  ;;  %v912_v10 = vrot.slane %v911_v6, 2 }
 0x2c5   : > { %v824_v16 = vsel %vm636_vm2, %v822_v7, -inf }
 0x2c7   : > { %v826_v11 = vpop.permute.xlu0 %825 }
 0x2c8   : > { %v829_v13 = vsel %vm638_vm3, %v826_v11, -inf  ;;  %v828_v14 = vpop.permute.xlu1 %827 }
 0x2c9   : > { %v831_v17 = vmax.f32 %v823_v12, %v829_v13  ;;  %v830_v18 = vsel %vm638_vm3, %v828_v14, -inf  ;;  %v885_v14 = vadd.f32 %v884_v9, %v883_v60  ;;  %v3119_v60 = vld [vmem:[%s4494_s3 + $0x150] sm:$0xff]  }
 0x2ca   : > { %v832_v20 = vmax.f32 %v824_v16, %v830_v18 }
 0x2cb   : > { %v833_v22 = vmax.f32 %v817_v15, %v831_v17  ;;  %v3020_v24 = vpop.permute.xlu0 %3019  ;;  %v913_v15 = vmax.f32 %v911_v6, %v912_v10 }
 0x2cc   : > { %v834_v27 = vmax.f32 %v818_v19, %v832_v20  ;;  %v3022_v28 = vunpack.i.h.bf16 %v3020_v24  ;;  %v3021_v29 = vunpack.i.l.bf16 %v3020_v24  ;;  %v886_v19 = vrot.slane %v885_v14, 1 }
 0x2cd   : > { %v835_v30 = vrot.slane %v833_v22, 7  ;;  %v841_v31 = vrot.slane %v833_v22, 1  ;;  %v851_v34 = vrot.slane %v833_v22, 6  ;;  %v857_v35 = vrot.slane %v833_v22, 2 }
 0x2ce   : > { %v836_v2 = vrot.slane %v834_v27, 7  ;;  %v842_v36 = vrot.slane %v834_v27, 1  ;;  %v852_v38 = vrot.slane %v834_v27, 6  ;;  %v858_v39 = vrot.slane %v834_v27, 2 }
 0x2cf   : > { %v925_v41 = vmax.f32 %v3657_v40, %v3022_v28  ;;  %v937_v44 = vmax.f32 %v3647_v37, %v3021_v29 }
 0x2d0   : > { %v837_v48 = vsel %vm689_vm4, %v835_v30, %v836_v2  ;;  %v838_v50 = vsel %vm689_vm4, %v836_v2, %v835_v30  ;;  %v844_v51 = vsel %vm700_vm7, %v842_v36, %v841_v31  ;;  %v843_v52 = vsel %vm700_vm7, %v841_v31, %v842_v36 }
 0x2d1   : > { %v846_v53 = vsel %vm3506_vm6, %v844_v51, -inf  ;;  %v3028_v40 = vpack.i.bf16 %v925_v41, %v937_v44  ;;  %v839_v37 = vsel %vm3502_vm5, %v838_v50, -inf  ;;  %v853_v54 = vsel %vm715_vm8, %v851_v34, %v852_v38  ;;  %v3109_v50 = vld [vmem:[%s4494_s3 + $0x178] sm:$0xff]  }
 0x2d2   : > { %v848_v55 = vmax.f32 %v837_v48, %v846_v53  ;;  %v847_v57 = vmax.f32 %v839_v37, %v843_v52  ;;  %v854_v58 = vsel %vm715_vm8, %v852_v38, %v851_v34  ;;  %v859_v59 = vsel %vm726_vm11, %v857_v35, %v858_v39  ;;  %v3110_v51 = vld [vmem:[%s4494_s3 + $0x138] sm:$0xff]   ;;  %v3111_v52 = vld [vmem:[%s4494_s3 + $0x170] sm:$0xff]   ;;  %2959 = vmatprep.subr.bf16.mxu1 %v3109_v50 }
 0x2d3   : > { %3029 = vrot.lane.b32.xlu0 %v3028_v40, %s3273_s30  ;;  %v855_v33 = vsel %vm3512_vm9, %v854_v58, -inf  ;;  %v860_v32 = vsel %vm726_vm11, %v858_v39, %v857_v35  ;;  %2960 = vmatpush3.bf16.msra.mxu1 %v3110_v51  ;;  %v3112_v37 = vld [vmem:[%s4494_s3 + $0x130] sm:$0xff]   ;;  %v3115_v58 = vld [vmem:[%s4494_s3 + $0x160] sm:$0xff]  }
 0x2d4   : > { %v850_v61 = vmax.f32 %v834_v27, %v848_v55  ;;  %v849_v62 = vmax.f32 %v833_v22, %v847_v57  ;;  %v862_v63 = vsel %vm3516_vm10, %v860_v32, -inf  ;;  %v863_v0 = vmax.f32 %v855_v33, %v859_v59  ;;  %2961 = vmatprep.subr.bf16.mxu1 %v3111_v52  ;;  %v3114_v57 = vld [vmem:[%s4494_s3 + $0x128] sm:$0xff]   ;;  %v3116_v59 = vld [vmem:[%s4494_s3 + $0x120] sm:$0xff]   ;;  %v3117_v33 = vld [vmem:[%s4494_s3 + $0x158] sm:$0xff]  }
 0x2d5   : > { %v864_v1 = vmax.f32 %v853_v54, %v862_v63  ;;  %v914_v22 = vrot.slane %v913_v15, 1  ;;  %v887_v27 = vadd.f32 %v886_v19, %v885_v14  ;;  %v3113_v54 = vld [vmem:[%s4494_s3 + $0x168] sm:$0xff]   ;;  %v3118_v32 = vld [vmem:[%s4494_s3 + $0x118] sm:$0xff]  }
 0x2d6   : > { %v3739_v7 = vmax.f32 %v849_v62, %v863_v0  ;;  %v1107_v62 = vld [vmem:[%s4495_s4] sm:$0x1] }
 0x2d7   : > { %v3741_v8 = vmax.f32 %v850_v61, %v864_v1  ;;  %v915_v29 = vmax.f32 %v913_v15, %v914_v22  ;;  %v973_v35 = vpack.c.bf16 %v887_v27, %v887_v27  ;;  %2962 = vmatpush3.bf16.msra.mxu1 %v3112_v37  ;;  %v3120_v61 = vld [vmem:[%s4494_s3 + $0x110] sm:$0xff]   ;;  %v1527_v1 = vadd.f32 %v3688_v56, %v1107_v62  ;;  %v3124_v56 = vld [vmem:[%s4494_s3 + $0x100] sm:$0xff]   ;;  %v3126_v22 = vld [vmem:[%s4494_s3 + $0x1b8] sm:$0xff]  }
 0x2d8   : > { %2963 = vmatprep.subr.bf16.mxu1 %v3113_v54  ;;  %v3139_v37 = vld [vmem:[%s4494_s3 + $0x1c0] sm:$0xff]  }
 0x2d9   : > { %v888_v42 = vadd.f32 %v3741_v8, %v3739_v7  ;;  %v916_v11 = vmax.f32 %v3739_v7, %v3741_v8  ;;  %v3140_v54 = vld [vmem:[%s4494_s3 + $0x180] sm:$0xff]  }
 0x2db   : > { %v889_v12 = vrot.slane %v888_v42, 4  ;;  %v917_v13 = vrot.slane %v916_v11, 4  ;;  %2964 = vmatpush3.bf16.msra.mxu1 %v3114_v57 }
 0x2dc   : > { %2965 = vmatprep.subr.bf16.mxu1 %v3115_v58 }
 0x2dd   : > { %v890_v43 = vadd.f32 %v889_v12, %v888_v42  ;;  %v918_v16 = vmax.f32 %v916_v11, %v917_v13  ;;  %v3121_v11 = vld [vmem:[%s4494_s3 + $0x148] sm:$0xff]   ;;  %v3123_v13 = vld [vmem:[%s4494_s3 + $0x140] sm:$0xff]  }
 0x2de   : > { %v3122_v12 = vld [vmem:[%s4494_s3 + $0x108] sm:$0xff]  }
 0x2df   : > { %v891_v17 = vrot.slane %v890_v43, 2  ;;  %v919_v18 = vrot.slane %v918_v16, 2  ;;  %2966 = vmatpush3.bf16.msra.mxu1 %v3116_v59 }
 0x2e0   : > { %2967 = vmatprep.subr.bf16.mxu1 %v3117_v33 }
 0x2e1   : > { %v892_v20 = vadd.f32 %v891_v17, %v890_v43  ;;  %v920_v24 = vmax.f32 %v918_v16, %v919_v18 }
 0x2e3   : > { %v893_v25 = vrot.slane %v892_v20, 1  ;;  %v921_v26 = vrot.slane %v920_v24, 1  ;;  %2968 = vmatpush3.bf16.msra.mxu1 %v3118_v32 }
 0x2e4   : > { %2969 = vmatprep.subr.bf16.mxu1 %v3119_v60 }
 0x2e5   : > { %v894_v28 = vadd.f32 %v893_v25, %v892_v20  ;;  %v922_v30 = vmax.f32 %v920_v24, %v921_v26  ;;  %v3125_v20 = vld [vmem:[%s4494_s3 + $0x1f8] sm:$0xff]   ;;  %v3127_v24 = vld [vmem:[%s4494_s3 + $0x1f0] sm:$0xff]  }
 0x2e6   : > { %2981 = vmatprep.subr.bf16.mxu0 %v3125_v20  ;;  %v1716_v20 = vld [vmem:[%s4496_s5 + $0x1a8] sm:$0xff] }
 0x2e7   : > { %v974_v31 = vpack.c.bf16 %v894_v28, %v894_v28  ;;  %v3023_v34 = vpack.i.bf16 %v915_v29, %v922_v30  ;;  %2970 = vmatpush3.bf16.msra.mxu1 %v3120_v61 }
 0x2e8   : > { %2971 = vmatprep.subr.bf16.mxu1 %v3121_v11 }
 0x2e9   : > { %1564 = vmatprep.mubr.bf16.mxu0 %v974_v31  ;;  %3024 = vrot.lane.b32.xlu1 %v3023_v34, %s3272_s25  ;;  %v3130_v34 = vld [vmem:[%s4494_s3 + $0x1a8] sm:$0xff]  }
 0x2ea   : > { %1565 = vmatmul.mubr.bf16.vlgmr.msra.gmra.mxu0 %v973_v35  ;;  %v3131_v35 = vld [vmem:[%s4494_s3 + $0x1e0] sm:$0xff]  }
 0x2eb   : > { %2972 = vmatpush3.bf16.msra.mxu1 %v3122_v12  ;;  %2982 = vmatpush3.bf16.msra.mxu0 %v3126_v22  ;;  %v1718_v22 = vld [vmem:[%s4496_s5 + $0x1b8] sm:$0xff] }
 0x2ec   : > { %2973 = vmatprep.subr.bf16.mxu1 %v3123_v13  ;;  %2983 = vmatprep.subr.bf16.mxu0 %v3127_v24  ;;  %v1715_v24 = vld [vmem:[%s4496_s5 + $0x1a0] sm:$0xff] }
 0x2ef   : > { %2974 = vmatpush3.bf16.msra.mxu1 %v3124_v56 }
 0x345   : > { %v3030_v2 = vpop.permute.xlu0 %3029 }
 0x346   : > { %v3032_v36 = vunpack.i.h.bf16 %v3030_v2  ;;  %v3031_v38 = vunpack.i.l.bf16 %v3030_v2  ;;  %v3132_v2 = vld [vmem:[%s4494_s3 + $0x1a0] sm:$0xff]  }
 0x348   : > { %v928_v39 = vmax.f32 %v925_v41, %v3032_v36  ;;  %v940_v45 = vmax.f32 %v937_v44, %v3031_v38  ;;  %v3133_v36 = vld [vmem:[%s4494_s3 + $0x1d8] sm:$0xff]  }
 0x349   : > { %v3134_v38 = vld [vmem:[%s4494_s3 + $0x198] sm:$0xff]  }
 0x34a   : > { %v3038_v47 = vpack.i.bf16 %v928_v39, %v940_v45 }
 0x34c   : > { %3039 = vrot.lane.b32.xlu0 %v3038_v47, %s3275_s18 }
 0x35b   : > { %v3025_v48 = vpop.permute.xlu1 %3024 }
 0x35c   : > { %v3027_v53 = vunpack.i.h.bf16 %v3025_v48  ;;  %v3026_v41 = vunpack.i.l.bf16 %v3025_v48 }
 0x35e   : > { %v949_v44 = vmax.f32 %v915_v29, %v3027_v53  ;;  %v961_v40 = vmax.f32 %v922_v30, %v3026_v41  ;;  %v3128_v29 = vld [vmem:[%s4494_s3 + $0x1b0] sm:$0xff]   ;;  %v3129_v30 = vld [vmem:[%s4494_s3 + $0x1e8] sm:$0xff]  }
 0x35f   : > { %2984 = vmatpush3.bf16.msra.mxu0 %v3128_v29  ;;  %v1713_v29 = vld [vmem:[%s4496_s5 + $0x190] sm:$0xff] }
 0x360   : > { %v3033_v55 = vpack.i.bf16 %v949_v44, %v961_v40  ;;  %2985 = vmatprep.subr.bf16.mxu0 %v3129_v30  ;;  %v1708_v30 = vld [vmem:[%s4496_s5 + $0x168] sm:$0xff] }
 0x362   : > { %3034 = vrot.lane.b32.xlu1 %v3033_v55, %s3273_s30  ;;  %s3276_s30 = smov 64  }
 0x363   : > { %2986 = vmatpush3.bf16.msra.mxu0 %v3130_v34  ;;  %v1707_v34 = vld [vmem:[%s4496_s5 + $0x160] sm:$0xff] }
 0x364   : > { %2987 = vmatprep.subr.bf16.mxu0 %v3131_v35  ;;  %v1709_v35 = vld [vmem:[%s4496_s5 + $0x170] sm:$0xff] }
 0x367   : > { %2988 = vmatpush3.bf16.msra.mxu0 %v3132_v2  ;;  %v1704_v2 = vld [vmem:[%s4496_s5 + $0x148] sm:$0xff] }
 0x368   : > { %2989 = vmatprep.subr.bf16.mxu0 %v3133_v36  ;;  %v1706_v36 = vld [vmem:[%s4496_s5 + $0x158] sm:$0xff] }
 0x36b   : > { %2990 = vmatpush3.bf16.msra.mxu0 %v3134_v38  ;;  %v1703_v38 = vld [vmem:[%s4496_s5 + $0x140] sm:$0xff] }
 0x3aa   : > { %v2953_v63 = vpop.f32.mrf.mxu0 }
 0x3ac   : > { %v2954_v0 = vpop.f32.mrf.mxu0 }
 0x3ad   : > { %v2955_v6 = vadd.f32 %v2954_v0, %v2953_v63 }
 0x3ae   : > { %v2956_v9 = vpop.f32.mrf.mxu0 }
 0x3af   : > { %v3790_v42 = vadd.f32 %v2955_v6, %v1527_v1 }
 0x3b0   : > { %v2957_v10 = vpop.f32.mrf.mxu0 }
 0x3be   : > { %v3040_v14 = vpop.permute.xlu0 %3039 }
 0x3bf   : > { %v3042_v43 = vunpack.i.h.bf16 %v3040_v14  ;;  %v3041_v15 = vunpack.i.l.bf16 %v3040_v14  ;;  %v1724_v14 = vld [vmem:[%s4496_s5 + $0x1e8] sm:$0xff] }
 0x3c0   : > { %1749 = vmatprep.subr.mxu1 %v1724_v14  ;;  %v1671_v14 = vld [vmem:[%s4496_s5 + $0x40] sm:$0xff] }
 0x3c1   : > { %v931_v16 = vmax.f32 %v928_v39, %v3042_v43  ;;  %v943_v17 = vmax.f32 %v940_v45, %v3041_v15  ;;  %v3135_v39 = vld [vmem:[%s4494_s3 + $0x1d0] sm:$0xff]   ;;  %v1726_v43 = vld [vmem:[%s4496_s5 + $0x1f8] sm:$0xff]  ;;  %v1723_v15 = vld [vmem:[%s4496_s5 + $0x1e0] sm:$0xff] }
 0x3c2   : > { %v3136_v45 = vld [vmem:[%s4494_s3 + $0x190] sm:$0xff]   ;;  %2991 = vmatprep.subr.bf16.mxu0 %v3135_v39 }
 0x3c3   : > { %v3048_v18 = vpack.i.bf16 %v931_v16, %v943_v17  ;;  %2992 = vmatpush3.bf16.msra.mxu0 %v3136_v45  ;;  %v1705_v39 = vld [vmem:[%s4496_s5 + $0x150] sm:$0xff]  ;;  %v1700_v45 = vld [vmem:[%s4496_s5 + $0x128] sm:$0xff] }
 0x3c5   : > { %3049 = vrot.lane.b32.xlu0 %v3048_v18, %s3276_s30  ;;  %v1719_v18 = vld [vmem:[%s4496_s5 + $0x1c0] sm:$0xff] }
 0x3d4   : > { %v3035_v19 = vpop.permute.xlu1 %3034 }
 0x3d5   : > { %v3037_v25 = vunpack.i.h.bf16 %v3035_v19  ;;  %v3036_v26 = vunpack.i.l.bf16 %v3035_v19  ;;  %v1721_v19 = vld [vmem:[%s4496_s5 + $0x1d0] sm:$0xff] }
 0x3d7   : > { %v952_v27 = vmax.f32 %v949_v44, %v3037_v25  ;;  %v964_v28 = vmax.f32 %v961_v40, %v3036_v26  ;;  %v3137_v44 = vld [vmem:[%s4494_s3 + $0x1c8] sm:$0xff]   ;;  %v1717_v25 = vld [vmem:[%s4496_s5 + $0x1b0] sm:$0xff] }
 0x3d8   : > { %v3138_v40 = vld [vmem:[%s4494_s3 + $0x188] sm:$0xff]   ;;  %2993 = vmatprep.subr.bf16.mxu0 %v3137_v44 }
 0x3d9   : > { %v3043_v31 = vpack.i.bf16 %v952_v27, %v964_v28  ;;  %2994 = vmatpush3.bf16.msra.mxu0 %v3138_v40  ;;  %v1712_v26 = vld [vmem:[%s4496_s5 + $0x188] sm:$0xff]  ;;  %v1694_v40 = vld [vmem:[%s4496_s5 + $0xf8] sm:$0xff] }
 0x3da   : > { %2995 = vmatprep.subr.bf16.mxu0 %v3139_v37  ;;  %v1692_v44 = vld [vmem:[%s4496_s5 + $0xe8] sm:$0xff]  ;;  %v1691_v37 = vld [vmem:[%s4496_s5 + $0xe0] sm:$0xff] }
 0x3db   : > { %3044 = vrot.lane.b32.xlu1 %v3043_v31, %s3275_s18  ;;  %v1710_v31 = vld [vmem:[%s4496_s5 + $0x178] sm:$0xff] }
 0x3dd   : > { %2996 = vmatpush3.bf16.msra.mxu0 %v3140_v54  ;;  %v1693_v54 = vld [vmem:[%s4496_s5 + $0xf0] sm:$0xff] }
 0x3de   : > { %1820 = vmatprep.subr.mxu0 %v1726_v43  ;;  %v1673_v43 = vld [vmem:[%s4496_s5 + $0x50] sm:$0xff] }
 0x437   : > { %v3050_v47 = vpop.permute.xlu0 %3049 }
 0x438   : > { %v3052_v48 = vunpack.i.h.bf16 %v3050_v47  ;;  %v3051_v50 = vunpack.i.l.bf16 %v3050_v47  ;;  %v1702_v47 = vld [vmem:[%s4496_s5 + $0x138] sm:$0xff] }
 0x43a   : > { %v934_v51 = vmax.f32 %v931_v16, %v3052_v48  ;;  %v946_v52 = vmax.f32 %v943_v17, %v3051_v50  ;;  %v1720_v16 = vld [vmem:[%s4496_s5 + $0x1c8] sm:$0xff]  ;;  %v1722_v17 = vld [vmem:[%s4496_s5 + $0x1d8] sm:$0xff]  ;;  %v1699_v48 = vld [vmem:[%s4496_s5 + $0x120] sm:$0xff] }
 0x43b   : > { %v1701_v50 = vld [vmem:[%s4496_s5 + $0x130] sm:$0xff] }
 0x43c   : > { %v975_v53 = vpack.c.bf16 %v934_v51, %v934_v51  ;;  %v976_v41 = vpack.c.bf16 %v946_v52, %v946_v52  ;;  %v1696_v51 = vld [vmem:[%s4496_s5 + $0x108] sm:$0xff]  ;;  %v1698_v52 = vld [vmem:[%s4496_s5 + $0x118] sm:$0xff] }
 0x43e   : > { %1604 = vmatprep.mubr.bf16.mxu1 %v976_v41  ;;  %v1697_v41 = vld [vmem:[%s4496_s5 + $0x110] sm:$0xff] }
 0x43f   : > { %1605 = vmatmul.mubr.bf16.vlgmr.msra.gmra.mxu1 %v975_v53  ;;  %v1695_v53 = vld [vmem:[%s4496_s5 + $0x100] sm:$0xff] }
 0x440   : > { %1750 = vmatpush1.msra.mxu1 %v1723_v15  ;;  %v1668_v15 = vld [vmem:[%s4496_s5 + $0x28] sm:$0xff] }
 0x441   : > { %1751 = vmatprep.subr.mxu1 %v1720_v16  ;;  %v1667_v16 = vld [vmem:[%s4496_s5 + $0x20] sm:$0xff] }
 0x442   : > { %1752 = vmatpush1.msra.mxu1 %v1719_v18  ;;  %v1664_v18 = vld [vmem:[%s4496_s5 + $0x8] sm:$0xff] }
 0x443   : > { %1753 = vmatprep.subr.mxu1 %v1716_v20  ;;  %v1663_v20 = vld [vmem:[%s4496_s5] sm:$0xff] }
 0x444   : > { %1754 = vmatpush1.msra.mxu1 %v1715_v24  ;;  %v1968_v24 = vld [vmem:[%s4498_s7 + $0x1e8] sm:$0xff] }
 0x445   : > { %1755 = vmatprep.subr.mxu1 %v1712_v26  ;;  %v3277_v26 = vmov 0.0  }
 0x446   : > { %1813 = vmatprep.mubr.f32.mxu1 %v3277_v26 }
 0x44d   : > { %v3045_v55 = vpop.permute.xlu1 %3044 }
 0x44e   : > { %v3047_v57 = vunpack.i.h.bf16 %v3045_v55  ;;  %v3046_v58 = vunpack.i.l.bf16 %v3045_v55  ;;  %v1688_v55 = vld [vmem:[%s4496_s5 + $0xc8] sm:$0xff] }
 0x450   : > { %v955_v59 = vmax.f32 %v952_v27, %v3047_v57  ;;  %v967_v33 = vmax.f32 %v964_v28, %v3046_v58  ;;  %v1714_v27 = vld [vmem:[%s4496_s5 + $0x198] sm:$0xff]  ;;  %v1711_v28 = vld [vmem:[%s4496_s5 + $0x180] sm:$0xff] }
 0x451   : > { %1756 = vmatpush1.msra.mxu1 %v1711_v28  ;;  %v1690_v57 = vld [vmem:[%s4496_s5 + $0xd8] sm:$0xff]  ;;  %v1687_v58 = vld [vmem:[%s4496_s5 + $0xc0] sm:$0xff] }
 0x452   : > { %v3053_v32 = vpack.i.bf16 %v955_v59, %v967_v33  ;;  %1757 = vmatprep.subr.mxu1 %v1708_v30 }
 0x453   : > { %1758 = vmatpush1.msra.mxu1 %v1707_v34 }
 0x454   : > { %3054 = vrot.lane.b32.xlu1 %v3053_v32, %s3276_s30  ;;  %1759 = vmatprep.subr.mxu1 %v1704_v2  ;;  %v1686_v32 = vld [vmem:[%s4496_s5 + $0xb8] sm:$0xff]  ;;  %s393_s30 = scalar_lea.vmem %s4502_s11, %s2892_s26 }
 0x455   : > { %1760 = vmatpush1.msra.mxu1 %v1703_v38 }
 0x456   : > { %1761 = vmatprep.subr.mxu1 %v1700_v45 }
 0x457   : > { %1762 = vmatpush1.msra.mxu1 %v1699_v48 }
 0x458   : > { %1763 = vmatprep.subr.mxu1 %v1696_v51 }
 0x459   : > { %1764 = vmatpush1.msra.mxu1 %v1695_v53  ;;  %v1969_v53 = vld [vmem:[%s4498_s7 + $0x1f0] sm:$0xff] }
 0x45a   : > { %1765 = vmatprep.subr.mxu1 %v1692_v44  ;;  %v1966_v44 = vld [vmem:[%s4498_s7 + $0x1d8] sm:$0xff] }
 0x45b   : > { %1766 = vmatpush1.msra.mxu1 %v1691_v37  ;;  %v1965_v37 = vld [vmem:[%s4498_s7 + $0x1d0] sm:$0xff] }
 0x45c   : > { %1767 = vmatprep.subr.mxu1 %v1688_v55  ;;  %v1962_v55 = vld [vmem:[%s4498_s7 + $0x1b8] sm:$0xff] }
 0x45d   : > { %1768 = vmatpush1.msra.mxu1 %v1687_v58  ;;  %v1961_v58 = vld [vmem:[%s4498_s7 + $0x1b0] sm:$0xff] }
 0x4c6   : > { %v3055_v60 = vpop.permute.xlu1 %3054 }
 0x4c7   : > { %v3057_v61 = vunpack.i.h.bf16 %v3055_v60  ;;  %v3056_v62 = vunpack.i.l.bf16 %v3055_v60  ;;  %v1683_v60 = vld [vmem:[%s4496_s5 + $0xa0] sm:$0xff] }
 0x4c9   : > { %v958_v63 = vmax.f32 %v955_v59, %v3057_v61  ;;  %v970_v0 = vmax.f32 %v967_v33, %v3056_v62  ;;  %v1689_v59 = vld [vmem:[%s4496_s5 + $0xd0] sm:$0xff]  ;;  %v1684_v33 = vld [vmem:[%s4496_s5 + $0xa8] sm:$0xff] }
 0x4ca   : > { %1769 = vmatprep.subr.mxu1 %v1684_v33  ;;  %v1685_v61 = vld [vmem:[%s4496_s5 + $0xb0] sm:$0xff]  ;;  %v1680_v62 = vld [vmem:[%s4496_s5 + $0x88] sm:$0xff]  ;;  %v1958_v33 = vld [vmem:[%s4498_s7 + $0x198] sm:$0xff] }
 0x4cb   : > { %v977_v1 = vpack.c.bf16 %v958_v63, %v958_v63  ;;  %v978_v6 = vpack.c.bf16 %v970_v0, %v970_v0  ;;  %1770 = vmatpush1.msra.mxu1 %v1683_v60  ;;  %v1682_v63 = vld [vmem:[%s4496_s5 + $0x98] sm:$0xff]  ;;  %v1679_v0 = vld [vmem:[%s4496_s5 + $0x80] sm:$0xff]  ;;  %v1957_v60 = vld [vmem:[%s4498_s7 + $0x190] sm:$0xff] }
 0x4cc   : > { %1771 = vmatprep.subr.mxu1 %v1680_v62  ;;  %v1954_v62 = vld [vmem:[%s4498_s7 + $0x178] sm:$0xff] }
 0x4cd   : > { %1644 = vmatprep.mubr.bf16.mxu0 %v978_v6  ;;  %1772 = vmatpush1.msra.mxu1 %v1679_v0  ;;  %v1676_v6 = vld [vmem:[%s4496_s5 + $0x68] sm:$0xff]  ;;  %v1953_v0 = vld [vmem:[%s4498_s7 + $0x170] sm:$0xff] }
 0x4ce   : > { %1645 = vmatmul.mubr.bf16.vlgmr.msra.gmra.mxu0 %v977_v1  ;;  %v1681_v1 = vld [vmem:[%s4496_s5 + $0x90] sm:$0xff]  ;;  %1773 = vmatprep.subr.mxu1 %v1676_v6  ;;  %v1950_v6 = vld [vmem:[%s4498_s7 + $0x158] sm:$0xff] }
 0x4cf   : > { %1884 = vmatprep.mubr.f32.mxu0 %v3277_v26 }
 0x4ff   : > { %v2975_v9 = vpop.f32.mrf.mxu1 }
 0x501   : > { %v2976_v10 = vpop.f32.mrf.mxu1 }
 0x502   : > { %v2977_v11 = vadd.f32 %v2976_v10, %v2975_v9  ;;  %v1678_v9 = vld [vmem:[%s4496_s5 + $0x78] sm:$0xff]  ;;  %v1675_v10 = vld [vmem:[%s4496_s5 + $0x60] sm:$0xff] }
 0x503   : > { %v2978_v12 = vpop.f32.mrf.mxu1  ;;  %1774 = vmatpush1.msra.mxu1 %v1675_v10  ;;  %v1949_v10 = vld [vmem:[%s4498_s7 + $0x150] sm:$0xff] }
 0x504   : > { %v3856_v13 = vadd.f32 %v2977_v11, %v3790_v42  ;;  %v1725_v42 = vld [vmem:[%s4496_s5 + $0x1f0] sm:$0xff]  ;;  %v1672_v12 = vld [vmem:[%s4496_s5 + $0x48] sm:$0xff] }
 0x505   : > { %v2979_v56 = vpop.f32.mrf.mxu1  ;;  %1821 = vmatpush1.msra.mxu0 %v1725_v42  ;;  %v1677_v11 = vld [vmem:[%s4496_s5 + $0x70] sm:$0xff]  ;;  %1775 = vmatprep.subr.mxu1 %v1672_v12  ;;  %v1670_v42 = vld [vmem:[%s4496_s5 + $0x38] sm:$0xff] }
 0x506   : > { %1822 = vmatprep.subr.mxu0 %v1722_v17  ;;  %v1674_v56 = vld [vmem:[%s4496_s5 + $0x58] sm:$0xff]  ;;  %1776 = vmatpush1.msra.mxu1 %v1671_v14  ;;  %v1669_v17 = vld [vmem:[%s4496_s5 + $0x30] sm:$0xff] }
 0x507   : > { %1823 = vmatpush1.msra.mxu0 %v1721_v19  ;;  %1777 = vmatprep.subr.mxu1 %v1668_v15  ;;  %v1666_v19 = vld [vmem:[%s4496_s5 + $0x18] sm:$0xff]  ;;  %v1945_v14 = vld [vmem:[%s4498_s7 + $0x130] sm:$0xff] }
 0x508   : > { %1824 = vmatprep.subr.mxu0 %v1718_v22  ;;  %1778 = vmatpush1.msra.mxu1 %v1667_v16  ;;  %v1665_v22 = vld [vmem:[%s4496_s5 + $0x10] sm:$0xff]  ;;  %v1946_v12 = vld [vmem:[%s4498_s7 + $0x138] sm:$0xff] }
 0x509   : > { %1825 = vmatpush1.msra.mxu0 %v1717_v25  ;;  %1779 = vmatprep.subr.mxu1 %v1664_v18  ;;  %v1970_v25 = vld [vmem:[%s4498_s7 + $0x1f8] sm:$0xff]  ;;  %v1941_v16 = vld [vmem:[%s4498_s7 + $0x110] sm:$0xff] }
 0x50a   : > { %1826 = vmatprep.subr.mxu0 %v1714_v27  ;;  %1780 = vmatpush1.msra.mxu1 %v1663_v20  ;;  %v1942_v15 = vld [vmem:[%s4498_s7 + $0x118] sm:$0xff]  ;;  %v1937_v20 = vld [vmem:[%s4498_s7 + $0xf0] sm:$0xff] }
 0x50b   : > { %1827 = vmatpush1.msra.mxu0 %v1713_v29  ;;  %1993 = vmatprep.subr.mxu1 %v1968_v24  ;;  %v1938_v18 = vld [vmem:[%s4498_s7 + $0xf8] sm:$0xff] }
 0x50c   : > { %1828 = vmatprep.subr.mxu0 %v1710_v31  ;;  %v1934_v24 = vld [vmem:[%s4498_s7 + $0xd8] sm:$0xff] }
 0x50d   : > { %1829 = vmatpush1.msra.mxu0 %v1709_v35 }
 0x50e   : > { %1830 = vmatprep.subr.mxu0 %v1706_v36 }
 0x50f   : > { %1831 = vmatpush1.msra.mxu0 %v1705_v39 }
 0x510   : > { %1832 = vmatprep.subr.mxu0 %v1702_v47 }
 0x511   : > { %1833 = vmatpush1.msra.mxu0 %v1701_v50 }
 0x512   : > { %1834 = vmatprep.subr.mxu0 %v1698_v52 }
 0x513   : > { %1835 = vmatpush1.msra.mxu0 %v1697_v41  ;;  %v1964_v41 = vld [vmem:[%s4498_s7 + $0x1c8] sm:$0xff] }
 0x514   : > { %1836 = vmatprep.subr.mxu0 %v1694_v40  ;;  %v1963_v40 = vld [vmem:[%s4498_s7 + $0x1c0] sm:$0xff] }
 0x515   : > { %1837 = vmatpush1.msra.mxu0 %v1693_v54  ;;  %v1960_v54 = vld [vmem:[%s4498_s7 + $0x1a8] sm:$0xff] }
 0x516   : > { %1838 = vmatprep.subr.mxu0 %v1690_v57  ;;  %v1959_v57 = vld [vmem:[%s4498_s7 + $0x1a0] sm:$0xff] }
 0x517   : > { %1839 = vmatpush1.msra.mxu0 %v1689_v59  ;;  %v1956_v59 = vld [vmem:[%s4498_s7 + $0x188] sm:$0xff] }
 0x518   : > { %1840 = vmatprep.subr.mxu0 %v1686_v32  ;;  %v1955_v32 = vld [vmem:[%s4498_s7 + $0x180] sm:$0xff] }
 0x519   : > { %1841 = vmatpush1.msra.mxu0 %v1685_v61  ;;  %v1952_v61 = vld [vmem:[%s4498_s7 + $0x168] sm:$0xff] }
 0x51a   : > { %1842 = vmatprep.subr.mxu0 %v1682_v63  ;;  %v1951_v63 = vld [vmem:[%s4498_s7 + $0x160] sm:$0xff] }
 0x51b   : > { %1843 = vmatpush1.msra.mxu0 %v1681_v1  ;;  %v1948_v1 = vld [vmem:[%s4498_s7 + $0x148] sm:$0xff] }
 0x51c   : > { %1844 = vmatprep.subr.mxu0 %v1678_v9  ;;  %v1947_v9 = vld [vmem:[%s4498_s7 + $0x140] sm:$0xff] }
 0x51d   : > { %1845 = vmatpush1.msra.mxu0 %v1677_v11  ;;  %v1944_v11 = vld [vmem:[%s4498_s7 + $0x128] sm:$0xff] }
 0x51e   : > { %1846 = vmatprep.subr.mxu0 %v1674_v56  ;;  %v1943_v56 = vld [vmem:[%s4498_s7 + $0x120] sm:$0xff] }
 0x51f   : > { %1847 = vmatpush1.msra.mxu0 %v1673_v43  ;;  %v1940_v43 = vld [vmem:[%s4498_s7 + $0x108] sm:$0xff] }
 0x520   : > { %1848 = vmatprep.subr.mxu0 %v1670_v42  ;;  %v1939_v42 = vld [vmem:[%s4498_s7 + $0x100] sm:$0xff] }
 0x521   : > { %1849 = vmatpush1.msra.mxu0 %v1669_v17  ;;  %v1936_v17 = vld [vmem:[%s4498_s7 + $0xe8] sm:$0xff] }
 0x522   : > { %1850 = vmatprep.subr.mxu0 %v1666_v19  ;;  %v1935_v19 = vld [vmem:[%s4498_s7 + $0xe0] sm:$0xff] }
 0x523   : > { %1851 = vmatpush1.msra.mxu0 %v1665_v22  ;;  %v1932_v22 = vld [vmem:[%s4498_s7 + $0xc8] sm:$0xff] }
 0x524   : > { %2064 = vmatprep.subr.mxu0 %v1970_v25  ;;  %v1931_v25 = vld [vmem:[%s4498_s7 + $0xc0] sm:$0xff] }
 0x58e   : > { %v2997_v27 = vpop.f32.mrf.mxu0 }
 0x590   : > { %v2998_v28 = vpop.f32.mrf.mxu0 }
 0x591   : > { %v2999_v29 = vadd.f32 %v2998_v28, %v2997_v27  ;;  %v1933_v27 = vld [vmem:[%s4498_s7 + $0xd0] sm:$0xff]  ;;  %v1928_v28 = vld [vmem:[%s4498_s7 + $0xa8] sm:$0xff] }
 0x592   : > { %v3000_v30 = vpop.f32.mrf.mxu0 }
 0x593   : > { %v1647_v31 = vadd.f32 %v2999_v29, %v3856_v13  ;;  %v1967_v13 = vld [vmem:[%s4498_s7 + $0x1e0] sm:$0xff]  ;;  %v1930_v29 = vld [vmem:[%s4498_s7 + $0xb8] sm:$0xff] }
 0x594   : > { %v3001_v34 = vpop.f32.mrf.mxu0  ;;  %v1927_v30 = vld [vmem:[%s4498_s7 + $0xa0] sm:$0xff] }
 0x595   : > { %v1653_v35 = vand.u32 2147483647, %v1647_v31  ;;  %v1652_v47 = vmax.f32 %v1647_v31, 0.0  ;;  %v1924_v34 = vld [vmem:[%s4498_s7 + $0x88] sm:$0xff] }
 0x597   : > { %v1654_v2 = vsub.f32 0.0, %v1653_v35  ;;  %v1926_v35 = vld [vmem:[%s4498_s7 + $0x98] sm:$0xff] }
 0x599   : > { %v1655_v36 = vmul.f32 1.442695, %v1654_v2  ;;  %v1923_v2 = vld [vmem:[%s4498_s7 + $0x80] sm:$0xff] }
 0x59b   : > { %3249 = vpow2.f32 %v1655_v36  ;;  %v1925_v36 = vld [vmem:[%s4498_s7 + $0x90] sm:$0xff] }
 0x5a8   : > { %v3250_v38 = vpop.eup %3249 }
 0x5a9   : > { %v1657_v39 = vadd.f32 1.0, %v3250_v38  ;;  %v1920_v38 = vld [vmem:[%s4498_s7 + $0x68] sm:$0xff] }
 0x5ab   : > { %3251 = vlog2.f32 %v1657_v39  ;;  %v1922_v39 = vld [vmem:[%s4498_s7 + $0x78] sm:$0xff] }
 0x5b8   : > { %v3252_v45 = vpop.eup %3251 }
 0x5b9   : > { %v1659_v48 = vmul.f32 0.6931472, %v3252_v45  ;;  %v1919_v45 = vld [vmem:[%s4498_s7 + $0x60] sm:$0xff] }
 0x5bb   : > { %v1660_v50 = vadd.f32 %v1659_v48, %v1652_v47  ;;  %v1921_v47 = vld [vmem:[%s4498_s7 + $0x70] sm:$0xff]  ;;  %v1916_v48 = vld [vmem:[%s4498_s7 + $0x48] sm:$0xff] }
 0x5bd   : > { %3253 = vtanh.f32 %v1660_v50  ;;  %v1918_v50 = vld [vmem:[%s4498_s7 + $0x58] sm:$0xff] }
 0x5ca   : > { %v3254_v51 = vpop.eup %3253 }
 0x5cb   : > { %v4059_v52 = vmul.f32 %v3254_v51, %v1647_v31  ;;  %v1929_v31 = vld [vmem:[%s4498_s7 + $0xb0] sm:$0xff]  ;;  %v1915_v51 = vld [vmem:[%s4498_s7 + $0x40] sm:$0xff] }
 0x5cd   : > { %1814 = vmatmul.mubr.f32.vlgmr.msra.gmra.mxu1 %v4059_v52  ;;  %1885 = vmatmul.mubr.f32.vlgmr.msra.gmra.mxu0 %v4059_v52 }
 0x5ce   : > { %1994 = vmatpush1.msra.mxu1 %v1967_v13  ;;  %2065 = vmatpush1.msra.mxu0 %v1969_v53  ;;  %v1917_v13 = vld [vmem:[%s4498_s7 + $0x50] sm:$0xff]  ;;  %v1912_v53 = vld [vmem:[%s4498_s7 + $0x28] sm:$0xff] }
 0x5cf   : > { %1995 = vmatprep.subr.mxu1 %v1964_v41  ;;  %2066 = vmatprep.subr.mxu0 %v1966_v44  ;;  %v1914_v41 = vld [vmem:[%s4498_s7 + $0x38] sm:$0xff]  ;;  %v1911_v44 = vld [vmem:[%s4498_s7 + $0x20] sm:$0xff] }
 0x5d0   : > { %1996 = vmatpush1.msra.mxu1 %v1963_v40  ;;  %2067 = vmatpush1.msra.mxu0 %v1965_v37  ;;  %v1913_v40 = vld [vmem:[%s4498_s7 + $0x30] sm:$0xff]  ;;  %v1908_v37 = vld [vmem:[%s4498_s7 + $0x8] sm:$0xff] }
 0x5d1   : > { %1997 = vmatprep.subr.mxu1 %v1960_v54  ;;  %2068 = vmatprep.subr.mxu0 %v1962_v55  ;;  %v1910_v54 = vld [vmem:[%s4498_s7 + $0x18] sm:$0xff]  ;;  %v1907_v55 = vld [vmem:[%s4498_s7] sm:$0xff] }
 0x5d2   : > { %1998 = vmatpush1.msra.mxu1 %v1959_v57  ;;  %2069 = vmatpush1.msra.mxu0 %v1961_v58  ;;  %v1909_v57 = vld [vmem:[%s4498_s7 + $0x10] sm:$0xff] }
 0x5d3   : > { %1999 = vmatprep.subr.mxu1 %v1956_v59  ;;  %2070 = vmatprep.subr.mxu0 %v1958_v33  ;;  %v3143_v58 = vld [vmem:[%s4500_s9 + $0x74] ss:$8 sps:$4 sm:$0xff]   ;;  %v3141_v33 = vld [vmem:[%s4500_s9 + $0x70] ss:$8 sps:$4 sm:$0xff]  }
 0x5d4   : > { %2000 = vmatpush1.msra.mxu1 %v1955_v32  ;;  %2071 = vmatpush1.msra.mxu0 %v1957_v60  ;;  %v3146_v59 = vld [vmem:[%s4500_s9 + $0x174] ss:$8 sps:$4 sm:$0xff]   ;;  %v3144_v32 = vld [vmem:[%s4500_s9 + $0x170] ss:$8 sps:$4 sm:$0xff]   ;;  %v3149_v60 = vld [vmem:[%s4500_s9 + $0x64] ss:$8 sps:$4 sm:$0xff]  }
 0x5d5   : > { %2001 = vmatprep.subr.mxu1 %v1952_v61  ;;  %2072 = vmatprep.subr.mxu0 %v1954_v62  ;;  %v3152_v61 = vld [vmem:[%s4500_s9 + $0x164] ss:$8 sps:$4 sm:$0xff]   ;;  %v3150_v62 = vld [vmem:[%s4500_s9 + $0x160] ss:$8 sps:$4 sm:$0xff]  }
 0x5d6   : > { %2002 = vmatpush1.msra.mxu1 %v1951_v63  ;;  %2073 = vmatpush1.msra.mxu0 %v1953_v0  ;;  %v3155_v63 = vld [vmem:[%s4500_s9 + $0x54] ss:$8 sps:$4 sm:$0xff]   ;;  %v3153_v0 = vld [vmem:[%s4500_s9 + $0x50] ss:$8 sps:$4 sm:$0xff]  }
 0x5d7   : > { %2003 = vmatprep.subr.mxu1 %v1948_v1  ;;  %2074 = vmatprep.subr.mxu0 %v1950_v6  ;;  %v3156_v1 = vld [vmem:[%s4500_s9 + $0x150] ss:$8 sps:$4 sm:$0xff]   ;;  %v3161_v6 = vld [vmem:[%s4500_s9 + $0x44] ss:$8 sps:$4 sm:$0xff]  }
 0x5d8   : > { %2004 = vmatpush1.msra.mxu1 %v1947_v9  ;;  %2075 = vmatpush1.msra.mxu0 %v1949_v10  ;;  %v3164_v9 = vld [vmem:[%s4500_s9 + $0x144] ss:$8 sps:$4 sm:$0xff]   ;;  %v3159_v10 = vld [vmem:[%s4500_s9 + $0x40] ss:$8 sps:$4 sm:$0xff]  }
 0x5d9   : > { %2005 = vmatprep.subr.mxu1 %v1944_v11  ;;  %2076 = vmatprep.subr.mxu0 %v1946_v12  ;;  %v3162_v11 = vld [vmem:[%s4500_s9 + $0x140] ss:$8 sps:$4 sm:$0xff]   ;;  %v3167_v12 = vld [vmem:[%s4500_s9 + $0x34] ss:$8 sps:$4 sm:$0xff]  }
 0x5da   : > { %2006 = vmatpush1.msra.mxu1 %v1943_v56  ;;  %2077 = vmatpush1.msra.mxu0 %v1945_v14  ;;  %v3170_v56 = vld [vmem:[%s4500_s9 + $0x134] ss:$8 sps:$4 sm:$0xff]   ;;  %v3165_v14 = vld [vmem:[%s4500_s9 + $0x30] ss:$8 sps:$4 sm:$0xff]  }
 0x5db   : > { %2007 = vmatprep.subr.mxu1 %v1940_v43  ;;  %2078 = vmatprep.subr.mxu0 %v1942_v15  ;;  %v3168_v43 = vld [vmem:[%s4500_s9 + $0x130] ss:$8 sps:$4 sm:$0xff]   ;;  %v3173_v15 = vld [vmem:[%s4500_s9 + $0x24] ss:$8 sps:$4 sm:$0xff]  }
 0x5dc   : > { %2008 = vmatpush1.msra.mxu1 %v1939_v42  ;;  %2079 = vmatpush1.msra.mxu0 %v1941_v16  ;;  %v3176_v42 = vld [vmem:[%s4500_s9 + $0x124] ss:$8 sps:$4 sm:$0xff]   ;;  %v3171_v16 = vld [vmem:[%s4500_s9 + $0x20] ss:$8 sps:$4 sm:$0xff]  }
 0x5dd   : > { %2009 = vmatprep.subr.mxu1 %v1936_v17  ;;  %2080 = vmatprep.subr.mxu0 %v1938_v18  ;;  %v3174_v17 = vld [vmem:[%s4500_s9 + $0x120] ss:$8 sps:$4 sm:$0xff]   ;;  %v3179_v18 = vld [vmem:[%s4500_s9 + $0x14] ss:$8 sps:$4 sm:$0xff]  }
 0x5de   : > { %2010 = vmatpush1.msra.mxu1 %v1935_v19  ;;  %2081 = vmatpush1.msra.mxu0 %v1937_v20  ;;  %v3182_v19 = vld [vmem:[%s4500_s9 + $0x114] ss:$8 sps:$4 sm:$0xff]   ;;  %v3177_v20 = vld [vmem:[%s4500_s9 + $0x10] ss:$8 sps:$4 sm:$0xff]  }
 0x5df   : > { %2011 = vmatprep.subr.mxu1 %v1932_v22  ;;  %2082 = vmatprep.subr.mxu0 %v1934_v24  ;;  %v3180_v22 = vld [vmem:[%s4500_s9 + $0x110] ss:$8 sps:$4 sm:$0xff]   ;;  %v3185_v24 = vld [vmem:[%s4500_s9 + $0x4] ss:$8 sps:$4 sm:$0xff]  }
 0x5e0   : > { %2012 = vmatpush1.msra.mxu1 %v1931_v25  ;;  %2083 = vmatpush1.msra.mxu0 %v1933_v27  ;;  %v3188_v25 = vld [vmem:[%s4500_s9 + $0x104] ss:$8 sps:$4 sm:$0xff]   ;;  %v3183_v27 = vld [vmem:[%s4500_s9] ss:$8 sps:$4 sm:$0xff]  }
 0x5e1   : > { %2013 = vmatprep.subr.mxu1 %v1928_v28  ;;  %2084 = vmatprep.subr.mxu0 %v1930_v29  ;;  %v3186_v28 = vld [vmem:[%s4500_s9 + $0x100] ss:$8 sps:$4 sm:$0xff]   ;;  %v3191_v29 = vld [vmem:[%s4500_s9 + $0xf4] ss:$8 sps:$4 sm:$0xff]  }
 0x5e2   : > { %2014 = vmatpush1.msra.mxu1 %v1927_v30  ;;  %2085 = vmatpush1.msra.mxu0 %v1929_v31  ;;  %v3194_v30 = vld [vmem:[%s4500_s9 + $0x1f4] ss:$8 sps:$4 sm:$0xff]   ;;  %v3189_v31 = vld [vmem:[%s4500_s9 + $0xf0] ss:$8 sps:$4 sm:$0xff]  }
 0x5e3   : > { %2015 = vmatprep.subr.mxu1 %v1924_v34  ;;  %2086 = vmatprep.subr.mxu0 %v1926_v35  ;;  %v3192_v34 = vld [vmem:[%s4500_s9 + $0x1f0] ss:$8 sps:$4 sm:$0xff]   ;;  %v3197_v35 = vld [vmem:[%s4500_s9 + $0xe4] ss:$8 sps:$4 sm:$0xff]  }
 0x5e4   : > { %2016 = vmatpush1.msra.mxu1 %v1923_v2  ;;  %2087 = vmatpush1.msra.mxu0 %v1925_v36  ;;  %v3200_v2 = vld [vmem:[%s4500_s9 + $0x1e4] ss:$8 sps:$4 sm:$0xff]   ;;  %v3195_v36 = vld [vmem:[%s4500_s9 + $0xe0] ss:$8 sps:$4 sm:$0xff]  }
 0x5e5   : > { %2017 = vmatprep.subr.mxu1 %v1920_v38  ;;  %2088 = vmatprep.subr.mxu0 %v1922_v39  ;;  %v3198_v38 = vld [vmem:[%s4500_s9 + $0x1e0] ss:$8 sps:$4 sm:$0xff]   ;;  %v3203_v39 = vld [vmem:[%s4500_s9 + $0xd4] ss:$8 sps:$4 sm:$0xff]  }
 0x5e6   : > { %2018 = vmatpush1.msra.mxu1 %v1919_v45  ;;  %2089 = vmatpush1.msra.mxu0 %v1921_v47  ;;  %v3206_v45 = vld [vmem:[%s4500_s9 + $0x1d4] ss:$8 sps:$4 sm:$0xff]   ;;  %v3201_v47 = vld [vmem:[%s4500_s9 + $0xd0] ss:$8 sps:$4 sm:$0xff]  }
 0x5e7   : > { %2019 = vmatprep.subr.mxu1 %v1916_v48  ;;  %2090 = vmatprep.subr.mxu0 %v1918_v50  ;;  %v3204_v48 = vld [vmem:[%s4500_s9 + $0x1d0] ss:$8 sps:$4 sm:$0xff]   ;;  %v3209_v50 = vld [vmem:[%s4500_s9 + $0xc4] ss:$8 sps:$4 sm:$0xff]  }
 0x5e8   : > { %2020 = vmatpush1.msra.mxu1 %v1915_v51  ;;  %2091 = vmatpush1.msra.mxu0 %v1917_v13  ;;  %v3212_v51 = vld [vmem:[%s4500_s9 + $0x1c4] ss:$8 sps:$4 sm:$0xff]   ;;  %v3207_v13 = vld [vmem:[%s4500_s9 + $0xc0] ss:$8 sps:$4 sm:$0xff]  }
 0x5e9   : > { %2021 = vmatprep.subr.mxu1 %v1912_v53  ;;  %2092 = vmatprep.subr.mxu0 %v1914_v41  ;;  %v3210_v53 = vld [vmem:[%s4500_s9 + $0x1c0] ss:$8 sps:$4 sm:$0xff]   ;;  %v3213_v41 = vld [vmem:[%s4500_s9 + $0xb0] ss:$8 sps:$4 sm:$0xff]  }
 0x5ea   : > { %2022 = vmatpush1.msra.mxu1 %v1911_v44  ;;  %2093 = vmatpush1.msra.mxu0 %v1913_v40  ;;  %v3215_v44 = vld [vmem:[%s4500_s9 + $0xb4] ss:$8 sps:$4 sm:$0xff]   ;;  %v3216_v40 = vld [vmem:[%s4500_s9 + $0x1b0] ss:$8 sps:$4 sm:$0xff]  }
 0x5eb   : > { %2023 = vmatprep.subr.mxu1 %v1908_v37  ;;  %2094 = vmatprep.subr.mxu0 %v1910_v54  ;;  %v3218_v37 = vld [vmem:[%s4500_s9 + $0x1b4] ss:$8 sps:$4 sm:$0xff]   ;;  %v3221_v54 = vld [vmem:[%s4500_s9 + $0xa4] ss:$8 sps:$4 sm:$0xff]  }
 0x5ec   : > { %2024 = vmatpush1.msra.mxu1 %v1907_v55  ;;  %2057 = vmatprep.mubr.f32.mxu1 %v3277_v26  ;;  %v3224_v55 = vld [vmem:[%s4500_s9 + $0x1a4] ss:$8 sps:$4 sm:$0xff]  }
 0x5ed   : > { %2095 = vmatpush1.msra.mxu0 %v1909_v57  ;;  %2128 = vmatprep.mubr.f32.mxu0 %v3277_v26  ;;  %v3147_v26 = vld [vmem:[%s4500_s9 + $0x60] ss:$8 sps:$4 sm:$0xff]  }
 0x5ee   : > { %2058 = vmatmul.mubr.f32.vlgmr.msra.gmra.mxu1 %v4059_v52  ;;  %2129 = vmatmul.mubr.f32.vlgmr.msra.gmra.mxu0 %v4059_v52  ;;  %v3158_v52 = vld [vmem:[%s4500_s9 + $0x154] ss:$8 sps:$4 sm:$0xff]   ;;  %v3219_v57 = vld [vmem:[%s4500_s9 + $0xa0] ss:$8 sps:$4 sm:$0xff]  }
 0x5ef   : > { %2583 = vmatprep.subr.bf16.mxu1 %v3143_v58  ;;  %2626 = vmatprep.subr.bf16.mxu0 %v3146_v59  ;;  %v3222_v58 = vld [vmem:[%s4500_s9 + $0x1a0] ss:$8 sps:$4 sm:$0xff]   ;;  %v3227_v59 = vld [vmem:[%s4500_s9 + $0x94] ss:$8 sps:$4 sm:$0xff]  }
 0x5f0   : > { %2584 = vmatpush1.bf16.msra.mxu1 %v3141_v33  ;;  %2627 = vmatpush1.bf16.msra.mxu0 %v3144_v32  ;;  %v3230_v33 = vld [vmem:[%s4500_s9 + $0x194] ss:$8 sps:$4 sm:$0xff]   ;;  %v3225_v32 = vld [vmem:[%s4500_s9 + $0x90] ss:$8 sps:$4 sm:$0xff]  }
 0x5f1   : > { %2585 = vmatprep.subr.bf16.mxu1 %v3149_v60  ;;  %2628 = vmatprep.subr.bf16.mxu0 %v3152_v61  ;;  %v3228_v60 = vld [vmem:[%s4500_s9 + $0x190] ss:$8 sps:$4 sm:$0xff]   ;;  %v3233_v61 = vld [vmem:[%s4500_s9 + $0x84] ss:$8 sps:$4 sm:$0xff]  }
 0x5f4   : > { %2586 = vmatpush1.bf16.msra.mxu1 %v3147_v26  ;;  %2629 = vmatpush1.bf16.msra.mxu0 %v3150_v62  ;;  %v3236_v26 = vld [vmem:[%s4500_s9 + $0x184] ss:$8 sps:$4 sm:$0xff]   ;;  %v3231_v62 = vld [vmem:[%s4500_s9 + $0x80] ss:$8 sps:$4 sm:$0xff]  }
 0x5f5   : > { %2587 = vmatprep.subr.bf16.mxu1 %v3155_v63  ;;  %2630 = vmatprep.subr.bf16.mxu0 %v3158_v52  ;;  %v3234_v63 = vld [vmem:[%s4500_s9 + $0x180] ss:$8 sps:$4 sm:$0xff]   ;;  %v4446_v52 = vsub.s32 0, %v3473_v5 }
 0x5f8   : > { %2588 = vmatpush1.bf16.msra.mxu1 %v3153_v0  ;;  %2631 = vmatpush1.bf16.msra.mxu0 %v3156_v1  ;;  %v1739_v0 = vsub.s32 2, %v3473_v5  ;;  %v1727_v1 = vld [vmem:[%s4497_s6] sm:$0xf] }
 0x5f9   : > { %2589 = vmatprep.subr.bf16.mxu1 %v3161_v6  ;;  %2632 = vmatprep.subr.bf16.mxu0 %v3164_v9  ;;  %v4453_v6 = vsub.s32 1, %v3473_v5  ;;  %v1743_v9 = vsub.s32 3, %v3473_v5 }
 0x5fc   : > { %2590 = vmatpush1.bf16.msra.mxu1 %v3159_v10  ;;  %2633 = vmatpush1.bf16.msra.mxu0 %v3162_v11  ;;  %v1732_v10 = vrot.slane %v1727_v1, %v4446_v52  ;;  %v1740_v11 = vrot.slane %v1727_v1, %v1739_v0 }
 0x5fd   : > { %2591 = vmatprep.subr.bf16.mxu1 %v3167_v12  ;;  %2634 = vmatprep.subr.bf16.mxu0 %v3170_v56  ;;  %v1736_v12 = vrot.slane %v1727_v1, %v4453_v6  ;;  %v1744_v56 = vrot.slane %v1727_v1, %v1743_v9 }
 0x600   : > { %2592 = vmatpush1.bf16.msra.mxu1 %v3165_v14  ;;  %2635 = vmatpush1.bf16.msra.mxu0 %v3168_v43 }
 0x601   : > { %2593 = vmatprep.subr.bf16.mxu1 %v3173_v15  ;;  %2636 = vmatprep.subr.bf16.mxu0 %v3176_v42 }
 0x604   : > { %2594 = vmatpush1.bf16.msra.mxu1 %v3171_v16  ;;  %2637 = vmatpush1.bf16.msra.mxu0 %v3174_v17 }
 0x605   : > { %2595 = vmatprep.subr.bf16.mxu1 %v3179_v18  ;;  %2638 = vmatprep.subr.bf16.mxu0 %v3182_v19 }
 0x608   : > { %2596 = vmatpush1.bf16.msra.mxu1 %v3177_v20  ;;  %2639 = vmatpush1.bf16.msra.mxu0 %v3180_v22 }
 0x609   : > { %2597 = vmatprep.subr.bf16.mxu1 %v3185_v24  ;;  %2640 = vmatprep.subr.bf16.mxu0 %v3188_v25 }
 0x60c   : > { %2598 = vmatpush1.bf16.msra.mxu1 %v3183_v27  ;;  %2641 = vmatpush1.bf16.msra.mxu0 %v3186_v28 }
 0x60d   : > { %2599 = vmatprep.subr.bf16.mxu1 %v3191_v29  ;;  %2642 = vmatprep.subr.bf16.mxu0 %v3194_v30 }
 0x610   : > { %2600 = vmatpush2.bf16.msra.mxu1 %v3189_v31  ;;  %2643 = vmatpush2.bf16.msra.mxu0 %v3192_v34 }
 0x611   : > { %2601 = vmatprep.subr.bf16.mxu1 %v3197_v35  ;;  %2644 = vmatprep.subr.bf16.mxu0 %v3200_v2  ;;  %v1971_v2 = vld [vmem:[%s4499_s8] sm:$0xf] }
 0x614   : > { %2602 = vmatpush2.bf16.msra.mxu1 %v3195_v36  ;;  %2645 = vmatpush2.bf16.msra.mxu0 %v3198_v38 }
 0x615   : > { %2603 = vmatprep.subr.bf16.mxu1 %v3203_v39  ;;  %2646 = vmatprep.subr.bf16.mxu0 %v3206_v45  ;;  %v1976_v45 = vrot.slane %v1971_v2, %v4446_v52 }
 0x618   : > { %2604 = vmatpush2.bf16.msra.mxu1 %v3201_v47  ;;  %2647 = vmatpush2.bf16.msra.mxu0 %v3204_v48  ;;  %v1984_v47 = vrot.slane %v1971_v2, %v1739_v0 }
 0x619   : > { %2605 = vmatprep.subr.bf16.mxu1 %v3209_v50  ;;  %2648 = vmatprep.subr.bf16.mxu0 %v3212_v51  ;;  %v1980_v50 = vrot.slane %v1971_v2, %v4453_v6  ;;  %v1988_v51 = vrot.slane %v1971_v2, %v1743_v9 }
 0x61c   : > { %2606 = vmatpush2.bf16.msra.mxu1 %v3207_v13  ;;  %2649 = vmatpush2.bf16.msra.mxu0 %v3210_v53 }
 0x61d   : > { %2607 = vmatprep.subr.bf16.mxu1 %v3215_v44  ;;  %2650 = vmatprep.subr.bf16.mxu0 %v3218_v37 }
 0x620   : > { %2608 = vmatpush2.bf16.msra.mxu1 %v3213_v41  ;;  %2651 = vmatpush2.bf16.msra.mxu0 %v3216_v40 }
 0x621   : > { %2609 = vmatprep.subr.bf16.mxu1 %v3221_v54  ;;  %2652 = vmatprep.subr.bf16.mxu0 %v3224_v55 }
 0x624   : > { %2610 = vmatpush2.bf16.msra.mxu1 %v3219_v57  ;;  %2653 = vmatpush2.bf16.msra.mxu0 %v3222_v58 }
 0x625   : > { %2611 = vmatprep.subr.bf16.mxu1 %v3227_v59  ;;  %2654 = vmatprep.subr.bf16.mxu0 %v3230_v33 }
 0x628   : > { %2612 = vmatpush2.bf16.msra.mxu1 %v3225_v32  ;;  %2655 = vmatpush2.bf16.msra.mxu0 %v3228_v60 }
 0x629   : > { %2613 = vmatprep.subr.bf16.mxu1 %v3233_v61  ;;  %2656 = vmatprep.subr.bf16.mxu0 %v3236_v26 }
 0x62c   : > { %2614 = vmatpush2.bf16.msra.mxu1 %v3231_v62  ;;  %2657 = vmatpush2.bf16.msra.mxu0 %v3234_v63 }
 0x68d   : > { %v1815_v14 = vpop.f32.mrf.mxu1  ;;  %v1886_v43 = vpop.f32.mrf.mxu0 }
 0x68e   : > { %v1816_v15 = vadd.f32 %v1815_v14, %v1732_v10  ;;  %v1887_v42 = vadd.f32 %v1886_v43, %v1740_v11 }
 0x68f   : > { %v1817_v16 = vpop.f32.mrf.mxu1  ;;  %v1888_v17 = vpop.f32.mrf.mxu0 }
 0x690   : > { %v1818_v18 = vadd.f32 %v1817_v16, %v1736_v12  ;;  %v1889_v19 = vadd.f32 %v1888_v17, %v1744_v56  ;;  %v1891_v20 = vmul.f32 0.5, %v1816_v15  ;;  %v1893_v22 = vmul.f32 0.5, %v1887_v42 }
 0x692   : > { %v1892_v24 = vmul.f32 0.5, %v1818_v18  ;;  %v1894_v25 = vmul.f32 0.5, %v1889_v19  ;;  %3255 = vtanh.f32 %v1891_v20 }
 0x693   : > { %3257 = vtanh.f32 %v1893_v22 }
 0x694   : > { %3259 = vtanh.f32 %v1892_v24 }
 0x695   : > { %3261 = vtanh.f32 %v1894_v25 }
 0x69f   : > { %v3256_v5 = vpop.eup %3255 }
 0x6a0   : > { %v3258_v27 = vpop.eup %3257  ;;  %v1899_v30 = vadd.f32 1.0, %v3256_v5 }
 0x6a1   : > { %v3260_v28 = vpop.eup %3259  ;;  %v1901_v31 = vadd.f32 1.0, %v3258_v27 }
 0x6a2   : > { %v3262_v29 = vpop.eup %3261  ;;  %v1900_v34 = vadd.f32 1.0, %v3260_v28  ;;  %v1903_v36 = vmul.f32 0.5, %v1899_v30 }
 0x6a3   : > { %v1902_v35 = vadd.f32 1.0, %v3262_v29  ;;  %v1905_v38 = vmul.f32 0.5, %v1901_v31 }
 0x6a4   : > { %v1904_v39 = vmul.f32 0.5, %v1900_v34  ;;  %v2138_v13 = vrot.slane %v1903_v36, %v4446_v52 }
 0x6a5   : > { %v1906_v48 = vmul.f32 0.5, %v1902_v35  ;;  %v2146_v44 = vrot.slane %v1905_v38, %v4446_v52 }
 0x6a6   : > { %v2142_v40 = vrot.slane %v1904_v39, %v4446_v52  ;;  %v2151_v61 = vmul.f32 %v2138_v13, %v3403_v46  ;;  %v2155_v26 = vmul.f32 %v2138_v13, %v3412_v49 }
 0x6a7   : > { %v2150_v55 = vrot.slane %v1906_v48, %v4446_v52  ;;  %v2153_v62 = vmul.f32 %v2146_v44, %v3613_v21  ;;  %v2157_v63 = vmul.f32 %v2146_v44, %v3615_v23 }
 0x6a8   : > { %v2152_v0 = vmul.f32 %v2142_v40, %v3545_v3  ;;  %v2156_v1 = vmul.f32 %v2142_v40, %v3547_v4 }
 0x6a9   : > { %v2154_v10 = vmul.f32 %v2150_v55, %v3739_v7  ;;  %v2158_v11 = vmul.f32 %v2150_v55, %v3741_v8  ;;  %v2251_v7 = vld [vmem:[%s4501_s10] sm:$0x3] }
 0x6aa   : > { %v2256_v8 = vrot.slane %v2251_v7, %v4446_v52  ;;  %v2260_v17 = vrot.slane %v2251_v7, %v4453_v6 }
 0x6ae   : > { %v2059_v53 = vpop.f32.mrf.mxu1  ;;  %v2130_v41 = vpop.f32.mrf.mxu0 }
 0x6af   : > { %v2060_v37 = vadd.f32 %v2059_v53, %v1976_v45  ;;  %v2131_v54 = vadd.f32 %v2130_v41, %v1984_v47 }
 0x6b0   : > { %v2061_v57 = vpop.f32.mrf.mxu1  ;;  %v2132_v58 = vpop.f32.mrf.mxu0 }
 0x6b1   : > { %v2162_v59 = vrot.slane %v2060_v37, %v4446_v52  ;;  %v2170_v33 = vrot.slane %v2131_v54, %v4446_v52  ;;  %v2062_v32 = vadd.f32 %v2061_v57, %v1980_v50  ;;  %v2133_v60 = vadd.f32 %v2132_v58, %v1988_v51 }
 0x6b3   : > { %v2166_v9 = vrot.slane %v2062_v32, %v4446_v52  ;;  %v2174_v12 = vrot.slane %v2133_v60, %v4446_v52  ;;  %v2175_v56 = vadd.f32 %v2162_v59, %v2151_v61  ;;  %v2179_v46 = vadd.f32 %v2162_v59, %v2155_v26 }
 0x6b4   : > { %v2177_v14 = vadd.f32 %v2170_v33, %v2153_v62  ;;  %v2181_v49 = vadd.f32 %v2170_v33, %v2157_v63 }
 0x6b5   : > { %v2176_v21 = vadd.f32 %v2166_v9, %v2152_v0  ;;  %v2180_v43 = vadd.f32 %v2166_v9, %v2156_v1  ;;  %v2178_v23 = vadd.f32 %v2174_v12, %v2154_v10  ;;  %v2182_v15 = vadd.f32 %v2174_v12, %v2158_v11 }
 0x6b6   : > { %v2183_v4 = vpack.c.bf16 %v2179_v46, %v2175_v56  ;;  %v2185_v16 = vpack.c.bf16 %v2181_v49, %v2177_v14 }
 0x6b7   : > { %v2184_v3 = vpack.c.bf16 %v2180_v43, %v2176_v21  ;;  %v2186_v42 = vpack.c.bf16 %v2182_v15, %v2178_v23 }
 0x6b9   : > { %2615 = vmatprep.mubr.bf16.mxu1 %v2184_v3  ;;  %2658 = vmatprep.mubr.bf16.mxu0 %v2186_v42 }
 0x6ba   : > { %2616 = vmatmul.mubr.bf16.vlgmr.msra.gmra.mxu1 %v2183_v4  ;;  %2659 = vmatmul.mubr.bf16.vlgmr.msra.gmra.mxu0 %v2185_v16 }
 0x77a   : > { %v2617_v18 = vpop.f32.mrf.mxu1  ;;  %v2660_v19 = vpop.f32.mrf.mxu0 }
 0x77b   : > { %v2618_v20 = vadd.f32 %v2617_v18, %v2256_v8 }
 0x77c   : > { %v2619_v22 = vpop.f32.mrf.mxu1  ;;  %v2662_v24 = vpop.f32.mrf.mxu0 }
 0x77d   : > { %v2661_v25 = vadd.f32 %v2660_v19, %v2618_v20  ;;  %v2620_v5 = vadd.f32 %v2619_v22, %v2260_v17 }
 0x77e   : > { %v2621_v27 = vpop.f32.mrf.mxu1  ;;  %v2664_v28 = vpop.f32.mrf.mxu0 }
 0x77f   : > { %2669 = vst [vmem:[%s393_s30] sm:$0xff] %v2661_v25  ;;  %v2663_v29 = vadd.f32 %v2662_v24, %v2620_v5  ;;  %v2622_v30 = vadd.f32 %v2621_v27, %v2256_v8 }
 0x780   : > { %v2623_v52 = vpop.f32.mrf.mxu1  ;;  %v2666_v34 = vpop.f32.mrf.mxu0 }
 0x781   : > { %2670 = vst [vmem:[%s393_s30 + $0x8] sm:$0xff] %v2663_v29  ;;  %v2665_v31 = vadd.f32 %v2664_v28, %v2622_v30  ;;  %v2624_v6 = vadd.f32 %v2623_v52, %v2260_v17 }
 0x783   : > { %2671 = vst [vmem:[%s393_s30 + $0x10] sm:$0xff] %v2665_v31  ;;  %v2667_v35 = vadd.f32 %v2666_v34, %v2624_v6 }
 0x785   : > { %2672 = vst [vmem:[%s393_s30 + $0x18] sm:$0xff] %v2667_v35 }
 0x786 PF: > { %s21_s17 = sadd.s32 1, %s3269_s17  }
 0x787   : > { %p18_p4 = scmp.ge.s32.totalorder %s21_s17, 4  }
 0x789   :  { %20 = sbr.rel (!%p18_p4) target bundleno = 1 (0x1), region = 94 }

</bundles_post_ra>
